<compile_context>
chip_gen: v7x
topology: tpu7x:2x2x1
jax: 0.10.0
libtpu: 0.0.40
codegen_flags: <defaults>
</compile_context>

<pallas_src>
import math

import jax
import jax.numpy as jnp
from jax.experimental import pallas as pl
from jax.experimental.pallas import tpu as pltpu

_HIDDEN = 8      # hidden width of the MLP
_LANES = 128


def _round_up(a, m):
    return (a + m - 1) // m * m


def _mlp_kernel(w1_ref, b1_ref, w3_ref, b3_ref, s_ref, x_ref, o_ref, y_ref):
    """One batch tile of relu(x @ W1^T + b1) @ W3^T + b3.

    w1_ref: SMEM [16]        (PyTorch W1 [8, 2], row-major flattened)
    b1_ref: SMEM [8]
    w3_ref: SMEM [8]         (PyTorch W3 [1, 8] flattened)
    b3_ref: SMEM [1]
    s_ref : VMEM [256, 256]  0/1 de-interleave (gather) matrix
    x_ref : VMEM [TS, 256]   interleaved features: lane 2k = x0, lane 2k+1 = x1
    o_ref : VMEM [TS, 128]   one output per sample, lane-dense
    y_ref : VMEM [TS, 256]   scratch: [:, :128] = x0, [:, 128:] = x1
    """
    cdt = y_ref.dtype

    # ---- de-interleave on the (otherwise idle) MXU -------------------------
    # S is a 0/1 selection matrix (one 1 per column), so the gather is exact
    # at HIGHEST precision for f32 inputs and trivially exact for bf16 inputs.
    prec = (jax.lax.Precision.HIGHEST if cdt == jnp.float32
            else jax.lax.Precision.DEFAULT)
    y_ref[...] = jnp.dot(
        x_ref[...], s_ref[...],
        precision=prec, preferred_element_type=jnp.float32,
    ).astype(cdt)

    # ---- SMEM-resident params -> scalars, hoisted out of the chunk loop ----
    w1 = [w1_ref[i].astype(cdt) for i in range(2 * _HIDDEN)]
    b1 = [b1_ref[j].astype(cdt) for j in range(_HIDDEN)]
    w3 = [w3_ref[j].astype(cdt) for j in range(_HIDDEN)]
    b3 = b3_ref[0].astype(cdt)

    # ---- VPU chain, strip-mined so x0/x1/h/acc stay in vregs ----------------
    ts = o_ref.shape[0]
    ch = 32 if ts % 32 == 0 else 8       # ts is always a multiple of 8
    nchunks = ts // ch

    def chunk(c, carry):
        r = pl.multiple_of(c * ch, ch)
        x0 = y_ref[pl.ds(r, ch), pl.ds(0, _LANES)]
        x1 = y_ref[pl.ds(r, ch), pl.ds(_LANES, _LANES)]
        # j = 0 term also carries the output bias b3 (saves zeros init + add).
        h = x0 * w1[0] + x1 * w1[1] + b1[0]
        acc = jnp.maximum(h, 0) * w3[0] + b3
        for j in range(1, _HIDDEN):
            h = x0 * w1[2 * j] + x1 * w1[2 * j + 1] + b1[j]
            acc = acc + w3[j] * jnp.maximum(h, 0)
        o_ref[pl.ds(r, ch), :] = acc.astype(o_ref.dtype)
        return carry

    jax.lax.fori_loop(0, nchunks, chunk, 0)


def _choose_tile(n_rows, max_ts):
    """Largest tile <= max_ts; for big batches keep >= 4 grid steps (v7x)."""
    max_ts = max(64, _round_up(max_ts, 64))
    if n_rows <= max_ts:
        return n_rows                              # n_rows is a multiple of 8
    quarter = _round_up(-(-n_rows // 4), 64)       # >= 4 steps when affordable
    return max(min(max_ts, quarter), min(1024, max_ts))


def net_forward(x, w1, b1, w3, b3, *, max_tile_sublanes=2048,
                compute_dtype=jnp.float32):
    """Forward pass of Net.

    x : [B, 2] float32
    w1: [8, 2] (PyTorch layout), b1: [8]
    w3: [1, 8] (PyTorch layout), b3: [1]
    compute_dtype: jnp.float32 (default; matches the torch reference to 1e-5)
        or jnp.bfloat16 (v6e/v7x fast path: ~2x VALU throughput + half the x
        HBM bytes, but will NOT meet a 1e-5 tolerance).
    returns [B, 1] float32
    """
    B = x.shape[0]

    # ---- free layout plumbing: row-major view, pad only to 1024 samples ----
    b_pad = _round_up(B, 8 * _LANES)                    # 1024-sample quantum
    flat = x.astype(jnp.float32).reshape(-1)            # [2B] interleaved x0,x1
    if b_pad != B:
        flat = jnp.pad(flat, (0, 2 * (b_pad - B)))
    n_rows = b_pad // _LANES
    x2 = flat.reshape(n_rows, 2 * _LANES).astype(compute_dtype)

    # ---- 0/1 de-interleave matrix (constant-folded under jit) --------------
    lane = jnp.arange(2 * _LANES)[:, None]
    col = jnp.arange(2 * _LANES)[None, :]
    s_mat = ((col < _LANES) & (lane == 2 * col)) | (
        (col >= _LANES) & (lane == 2 * (col - _LANES) + 1))
    s_mat = s_mat.astype(compute_dtype)

    # ---- tiny params -> flat SMEM-resident scalars --------------------------
    w1f = w1.astype(jnp.float32).reshape(-1)            # [16]
    b1f = b1.astype(jnp.float32).reshape(-1)            # [8]
    w3f = w3.astype(jnp.float32).reshape(-1)            # [8]
    b3f = b3.astype(jnp.float32).reshape(-1)            # [1]

    ts = _choose_tile(n_rows, max_tile_sublanes)
    num_steps = pl.cdiv(n_rows, ts)                     # last block may be partial

    smem = pl.BlockSpec(memory_space=pltpu.MemorySpace.SMEM)

    out = pl.pallas_call(
        _mlp_kernel,
        out_shape=jax.ShapeDtypeStruct((n_rows, _LANES), jnp.float32),
        grid=(num_steps,),
        in_specs=[
            smem, smem, smem, smem,                                    # params
            pl.BlockSpec((2 * _LANES, 2 * _LANES), lambda i: (0, 0)),  # S (fetched once)
            pl.BlockSpec((ts, 2 * _LANES), lambda i: (i, 0)),          # x tile
        ],
        out_specs=pl.BlockSpec((ts, _LANES), lambda i: (i, 0)),
        scratch_shapes=[pltpu.VMEM((ts, 2 * _LANES), compute_dtype)],
        compiler_params=pltpu.CompilerParams(
            dimension_semantics=("parallel",),          # shards steps on v7x's 2 TCs
            vmem_limit_bytes=32 * 1024 * 1024,          # headroom for TS=2048 tiles
        ),
    )(w1f, b1f, w3f, b3f, s_mat, x2)

    # ---- undo the layout plumbing -------------------------------------------
    return out.reshape(b_pad)[:B].reshape(B, 1)


def init_params(key):
    """Deterministic params mirroring the PyTorch module's init (torch layout).

    linear1: weight [8, 2] xavier_uniform, bias [8] normal(std=1e-6)
    linear3: weight [1, 8] default kaiming-uniform, bias [1] uniform
    """
    k1, k2, k3, k4 = jax.random.split(key, 4)
    unit = _HIDDEN

    bound1 = math.sqrt(6.0 / (2 + unit))                # xavier_uniform
    w1 = jax.random.uniform(k1, (unit, 2), jnp.float32, -bound1, bound1)
    b1 = 1e-6 * jax.random.normal(k2, (unit,), jnp.float32)

    bound3 = 1.0 / math.sqrt(unit)                      # PyTorch Linear default
    w3 = jax.random.uniform(k3, (1, unit), jnp.float32, -bound3, bound3)
    b3 = jax.random.uniform(k4, (1,), jnp.float32, -bound3, bound3)

    return w1, b1, w3, b3


if __name__ == "__main__":
    key = jax.random.PRNGKey(0)
    k_params, k_x = jax.random.split(key)

    w1, b1, w3, b3 = init_params(k_params)

    B = 8
    x = jax.random.normal(k_x, (B, 2), jnp.float32)

    out = jax.jit(net_forward)(x, w1, b1, w3, b3)
    out = jax.block_until_ready(out)

    # Reference check (PyTorch semantics: y = relu(x W1^T + b1) W3^T + b3).
    ref = jnp.maximum(x @ w1.T + b1, 0.0) @ w3.T + b3
    assert out.shape == (B, 1), out.shape
    assert jnp.allclose(out, ref, atol=1e-5, rtol=1e-5), "mismatch vs reference"

    print("KERNEL_OK")
</pallas_src>

<mosaic_0001>
module attributes {stable_mosaic.version = 11 : i64} {
  func.func @_mlp_kernel(%arg0: i32, %arg1: memref<16xf32, #tpu.memory_space<smem>>, %arg2: memref<8xf32, #tpu.memory_space<smem>>, %arg3: memref<8xf32, #tpu.memory_space<smem>>, %arg4: memref<1xf32, #tpu.memory_space<smem>>, %arg5: memref<256x256xf32, #tpu.memory_space<vmem>>, %arg6: memref<8x256xf32, #tpu.memory_space<vmem>>, %arg7: memref<8x128xf32, #tpu.memory_space<vmem>>, %arg8: memref<8x256xf32, #tpu.memory_space<vmem>>) attributes {dimension_semantics = [#tpu.dimension_semantics<parallel>], iteration_bounds = array<i64: 1>, scalar_prefetch = 0 : i64, scratch_operands = 1 : i64, tpu.core_type = #tpu.core_type<tc>, window_params = [{transform_indices = @transform_0, window_bounds = array<i64: 16>}, {transform_indices = @transform_1, window_bounds = array<i64: 8>}, {transform_indices = @transform_2, window_bounds = array<i64: 8>}, {transform_indices = @transform_3, window_bounds = array<i64: 1>}, {pipeline_mode = #tpu.pipeline_mode<synchronous>, transform_indices = @transform_4, window_bounds = array<i64: 256, 256>}, {transform_indices = @transform_5, window_bounds = array<i64: 8, 256>}, {transform_indices = @transform_6, window_bounds = array<i64: 8, 128>}]} {
    %c0 = arith.constant 0 : index
    %c0_0 = arith.constant 0 : index
    %0 = vector.load %arg6[%c0, %c0_0] : memref<8x256xf32, #tpu.memory_space<vmem>>, vector<8x256xf32>
    %c0_1 = arith.constant 0 : index
    %c0_2 = arith.constant 0 : index
    %1 = vector.load %arg5[%c0_1, %c0_2] : memref<256x256xf32, #tpu.memory_space<vmem>>, vector<256x256xf32>
    %cst = arith.constant dense<0.000000e+00> : vector<8x256xf32>
    %2 = tpu.matmul %0, %1, %cst {dimension_numbers = #tpu.dot_dimension_numbers<[1], [0], [0], [1], [0, 0, 1, 1], [], []>, precision = #tpu.contract_precision<fp32>} : vector<8x256xf32>, vector<256x256xf32>, vector<8x256xf32> -> vector<8x256xf32>
    %c0_3 = arith.constant 0 : index
    %c0_4 = arith.constant 0 : index
    %3 = vector.load %arg8[%c0_3, %c0_4] : memref<8x256xf32, #tpu.memory_space<vmem>>, vector<8x256xf32>
    tpu.vector_store %arg8[%c0_3, %c0_4], %2 {strides = array<i32>} : memref<8x256xf32, #tpu.memory_space<vmem>>, vector<8x256xf32>,
    %c0_5 = arith.constant 0 : index
    %4 = memref.load %arg1[%c0_5] : memref<16xf32, #tpu.memory_space<smem>>
    %c1 = arith.constant 1 : index
    %5 = memref.load %arg1[%c1] : memref<16xf32, #tpu.memory_space<smem>>
    %c2 = arith.constant 2 : index
    %6 = memref.load %arg1[%c2] : memref<16xf32, #tpu.memory_space<smem>>
    %c3 = arith.constant 3 : index
    %7 = memref.load %arg1[%c3] : memref<16xf32, #tpu.memory_space<smem>>
    %c4 = arith.constant 4 : index
    %8 = memref.load %arg1[%c4] : memref<16xf32, #tpu.memory_space<smem>>
    %c5 = arith.constant 5 : index
    %9 = memref.load %arg1[%c5] : memref<16xf32, #tpu.memory_space<smem>>
    %c6 = arith.constant 6 : index
    %10 = memref.load %arg1[%c6] : memref<16xf32, #tpu.memory_space<smem>>
    %c7 = arith.constant 7 : index
    %11 = memref.load %arg1[%c7] : memref<16xf32, #tpu.memory_space<smem>>
    %c8 = arith.constant 8 : index
    %12 = memref.load %arg1[%c8] : memref<16xf32, #tpu.memory_space<smem>>
    %c9 = arith.constant 9 : index
    %13 = memref.load %arg1[%c9] : memref<16xf32, #tpu.memory_space<smem>>
    %c10 = arith.constant 10 : index
    %14 = memref.load %arg1[%c10] : memref<16xf32, #tpu.memory_space<smem>>
    %c11 = arith.constant 11 : index
    %15 = memref.load %arg1[%c11] : memref<16xf32, #tpu.memory_space<smem>>
    %c12 = arith.constant 12 : index
    %16 = memref.load %arg1[%c12] : memref<16xf32, #tpu.memory_space<smem>>
    %c13 = arith.constant 13 : index
    %17 = memref.load %arg1[%c13] : memref<16xf32, #tpu.memory_space<smem>>
    %c14 = arith.constant 14 : index
    %18 = memref.load %arg1[%c14] : memref<16xf32, #tpu.memory_space<smem>>
    %c15 = arith.constant 15 : index
    %19 = memref.load %arg1[%c15] : memref<16xf32, #tpu.memory_space<smem>>
    %c0_6 = arith.constant 0 : index
    %20 = memref.load %arg2[%c0_6] : memref<8xf32, #tpu.memory_space<smem>>
    %c1_7 = arith.constant 1 : index
    %21 = memref.load %arg2[%c1_7] : memref<8xf32, #tpu.memory_space<smem>>
    %c2_8 = arith.constant 2 : index
    %22 = memref.load %arg2[%c2_8] : memref<8xf32, #tpu.memory_space<smem>>
    %c3_9 = arith.constant 3 : index
    %23 = memref.load %arg2[%c3_9] : memref<8xf32, #tpu.memory_space<smem>>
    %c4_10 = arith.constant 4 : index
    %24 = memref.load %arg2[%c4_10] : memref<8xf32, #tpu.memory_space<smem>>
    %c5_11 = arith.constant 5 : index
    %25 = memref.load %arg2[%c5_11] : memref<8xf32, #tpu.memory_space<smem>>
    %c6_12 = arith.constant 6 : index
    %26 = memref.load %arg2[%c6_12] : memref<8xf32, #tpu.memory_space<smem>>
    %c7_13 = arith.constant 7 : index
    %27 = memref.load %arg2[%c7_13] : memref<8xf32, #tpu.memory_space<smem>>
    %c0_14 = arith.constant 0 : index
    %28 = memref.load %arg3[%c0_14] : memref<8xf32, #tpu.memory_space<smem>>
    %c1_15 = arith.constant 1 : index
    %29 = memref.load %arg3[%c1_15] : memref<8xf32, #tpu.memory_space<smem>>
    %c2_16 = arith.constant 2 : index
    %30 = memref.load %arg3[%c2_16] : memref<8xf32, #tpu.memory_space<smem>>
    %c3_17 = arith.constant 3 : index
    %31 = memref.load %arg3[%c3_17] : memref<8xf32, #tpu.memory_space<smem>>
    %c4_18 = arith.constant 4 : index
    %32 = memref.load %arg3[%c4_18] : memref<8xf32, #tpu.memory_space<smem>>
    %c5_19 = arith.constant 5 : index
    %33 = memref.load %arg3[%c5_19] : memref<8xf32, #tpu.memory_space<smem>>
    %c6_20 = arith.constant 6 : index
    %34 = memref.load %arg3[%c6_20] : memref<8xf32, #tpu.memory_space<smem>>
    %c7_21 = arith.constant 7 : index
    %35 = memref.load %arg3[%c7_21] : memref<8xf32, #tpu.memory_space<smem>>
    %c0_22 = arith.constant 0 : index
    %36 = memref.load %arg4[%c0_22] : memref<1xf32, #tpu.memory_space<smem>>
    %c0_i32 = arith.constant 0 : i32
    %c8_i32 = arith.constant 8 : i32
    %37 = arith.muli %c0_i32, %c8_i32 : i32
    %38 = tpu.assume_multiple %37, 8 : i32
    %39 = arith.index_cast %38 : i32 to index
    %c0_23 = arith.constant 0 : index
    %40 = vector.load %arg8[%39, %c0_23] : memref<8x256xf32, #tpu.memory_space<vmem>>, vector<8x128xf32>
    %41 = arith.index_cast %38 : i32 to index
    %c128 = arith.constant 128 : index
    %42 = vector.load %arg8[%41, %c128] : memref<8x256xf32, #tpu.memory_space<vmem>>, vector<8x128xf32>
    %43 = vector.broadcast %4 : f32 to vector<8x128xf32>
    %44 = arith.mulf %40, %43 : vector<8x128xf32>
    %45 = vector.broadcast %5 : f32 to vector<8x128xf32>
    %46 = arith.mulf %42, %45 : vector<8x128xf32>
    %47 = arith.addf %44, %46 : vector<8x128xf32>
    %48 = vector.broadcast %20 : f32 to vector<8x128xf32>
    %49 = arith.addf %47, %48 : vector<8x128xf32>
    %cst_24 = arith.constant 0.000000e+00 : f32
    %50 = vector.broadcast %cst_24 : f32 to vector<8x128xf32>
    %51 = arith.maximumf %49, %50 : vector<8x128xf32>
    %52 = vector.broadcast %28 : f32 to vector<8x128xf32>
    %53 = arith.mulf %51, %52 : vector<8x128xf32>
    %54 = vector.broadcast %36 : f32 to vector<8x128xf32>
    %55 = arith.addf %53, %54 : vector<8x128xf32>
    %56 = vector.broadcast %6 : f32 to vector<8x128xf32>
    %57 = arith.mulf %40, %56 : vector<8x128xf32>
    %58 = vector.broadcast %7 : f32 to vector<8x128xf32>
    %59 = arith.mulf %42, %58 : vector<8x128xf32>
    %60 = arith.addf %57, %59 : vector<8x128xf32>
    %61 = vector.broadcast %21 : f32 to vector<8x128xf32>
    %62 = arith.addf %60, %61 : vector<8x128xf32>
    %cst_25 = arith.constant 0.000000e+00 : f32
    %63 = vector.broadcast %cst_25 : f32 to vector<8x128xf32>
    %64 = arith.maximumf %62, %63 : vector<8x128xf32>
    %65 = vector.broadcast %29 : f32 to vector<8x128xf32>
    %66 = arith.mulf %65, %64 : vector<8x128xf32>
    %67 = arith.addf %55, %66 : vector<8x128xf32>
    %68 = vector.broadcast %8 : f32 to vector<8x128xf32>
    %69 = arith.mulf %40, %68 : vector<8x128xf32>
    %70 = vector.broadcast %9 : f32 to vector<8x128xf32>
    %71 = arith.mulf %42, %70 : vector<8x128xf32>
    %72 = arith.addf %69, %71 : vector<8x128xf32>
    %73 = vector.broadcast %22 : f32 to vector<8x128xf32>
    %74 = arith.addf %72, %73 : vector<8x128xf32>
    %cst_26 = arith.constant 0.000000e+00 : f32
    %75 = vector.broadcast %cst_26 : f32 to vector<8x128xf32>
    %76 = arith.maximumf %74, %75 : vector<8x128xf32>
    %77 = vector.broadcast %30 : f32 to vector<8x128xf32>
    %78 = arith.mulf %77, %76 : vector<8x128xf32>
    %79 = arith.addf %67, %78 : vector<8x128xf32>
    %80 = vector.broadcast %10 : f32 to vector<8x128xf32>
    %81 = arith.mulf %40, %80 : vector<8x128xf32>
    %82 = vector.broadcast %11 : f32 to vector<8x128xf32>
    %83 = arith.mulf %42, %82 : vector<8x128xf32>
    %84 = arith.addf %81, %83 : vector<8x128xf32>
    %85 = vector.broadcast %23 : f32 to vector<8x128xf32>
    %86 = arith.addf %84, %85 : vector<8x128xf32>
    %cst_27 = arith.constant 0.000000e+00 : f32
    %87 = vector.broadcast %cst_27 : f32 to vector<8x128xf32>
    %88 = arith.maximumf %86, %87 : vector<8x128xf32>
    %89 = vector.broadcast %31 : f32 to vector<8x128xf32>
    %90 = arith.mulf %89, %88 : vector<8x128xf32>
    %91 = arith.addf %79, %90 : vector<8x128xf32>
    %92 = vector.broadcast %12 : f32 to vector<8x128xf32>
    %93 = arith.mulf %40, %92 : vector<8x128xf32>
    %94 = vector.broadcast %13 : f32 to vector<8x128xf32>
    %95 = arith.mulf %42, %94 : vector<8x128xf32>
    %96 = arith.addf %93, %95 : vector<8x128xf32>
    %97 = vector.broadcast %24 : f32 to vector<8x128xf32>
    %98 = arith.addf %96, %97 : vector<8x128xf32>
    %cst_28 = arith.constant 0.000000e+00 : f32
    %99 = vector.broadcast %cst_28 : f32 to vector<8x128xf32>
    %100 = arith.maximumf %98, %99 : vector<8x128xf32>
    %101 = vector.broadcast %32 : f32 to vector<8x128xf32>
    %102 = arith.mulf %101, %100 : vector<8x128xf32>
    %103 = arith.addf %91, %102 : vector<8x128xf32>
    %104 = vector.broadcast %14 : f32 to vector<8x128xf32>
    %105 = arith.mulf %40, %104 : vector<8x128xf32>
    %106 = vector.broadcast %15 : f32 to vector<8x128xf32>
    %107 = arith.mulf %42, %106 : vector<8x128xf32>
    %108 = arith.addf %105, %107 : vector<8x128xf32>
    %109 = vector.broadcast %25 : f32 to vector<8x128xf32>
    %110 = arith.addf %108, %109 : vector<8x128xf32>
    %cst_29 = arith.constant 0.000000e+00 : f32
    %111 = vector.broadcast %cst_29 : f32 to vector<8x128xf32>
    %112 = arith.maximumf %110, %111 : vector<8x128xf32>
    %113 = vector.broadcast %33 : f32 to vector<8x128xf32>
    %114 = arith.mulf %113, %112 : vector<8x128xf32>
    %115 = arith.addf %103, %114 : vector<8x128xf32>
    %116 = vector.broadcast %16 : f32 to vector<8x128xf32>
    %117 = arith.mulf %40, %116 : vector<8x128xf32>
    %118 = vector.broadcast %17 : f32 to vector<8x128xf32>
    %119 = arith.mulf %42, %118 : vector<8x128xf32>
    %120 = arith.addf %117, %119 : vector<8x128xf32>
    %121 = vector.broadcast %26 : f32 to vector<8x128xf32>
    %122 = arith.addf %120, %121 : vector<8x128xf32>
    %cst_30 = arith.constant 0.000000e+00 : f32
    %123 = vector.broadcast %cst_30 : f32 to vector<8x128xf32>
    %124 = arith.maximumf %122, %123 : vector<8x128xf32>
    %125 = vector.broadcast %34 : f32 to vector<8x128xf32>
    %126 = arith.mulf %125, %124 : vector<8x128xf32>
    %127 = arith.addf %115, %126 : vector<8x128xf32>
    %128 = vector.broadcast %18 : f32 to vector<8x128xf32>
    %129 = arith.mulf %40, %128 : vector<8x128xf32>
    %130 = vector.broadcast %19 : f32 to vector<8x128xf32>
    %131 = arith.mulf %42, %130 : vector<8x128xf32>
    %132 = arith.addf %129, %131 : vector<8x128xf32>
    %133 = vector.broadcast %27 : f32 to vector<8x128xf32>
    %134 = arith.addf %132, %133 : vector<8x128xf32>
    %cst_31 = arith.constant 0.000000e+00 : f32
    %135 = vector.broadcast %cst_31 : f32 to vector<8x128xf32>
    %136 = arith.maximumf %134, %135 : vector<8x128xf32>
    %137 = vector.broadcast %35 : f32 to vector<8x128xf32>
    %138 = arith.mulf %137, %136 : vector<8x128xf32>
    %139 = arith.addf %127, %138 : vector<8x128xf32>
    %140 = arith.index_cast %38 : i32 to index
    %c0_32 = arith.constant 0 : index
    %141 = vector.load %arg7[%140, %c0_32] : memref<8x128xf32, #tpu.memory_space<vmem>>, vector<8x128xf32>
    tpu.vector_store %arg7[%140, %c0_32], %139 {strides = array<i32>} : memref<8x128xf32, #tpu.memory_space<vmem>>, vector<8x128xf32>,
    %c1_i32 = arith.constant 1 : i32
    return
  }
  func.func @transform_0(%arg0: i32) -> i32 {
    %c0_i32 = arith.constant 0 : i32
    %c0_i32_0 = arith.constant 0 : i32
    return %c0_i32 : i32
  }
  func.func @transform_1(%arg0: i32) -> i32 {
    %c0_i32 = arith.constant 0 : i32
    %c0_i32_0 = arith.constant 0 : i32
    return %c0_i32 : i32
  }
  func.func @transform_2(%arg0: i32) -> i32 {
    %c0_i32 = arith.constant 0 : i32
    %c0_i32_0 = arith.constant 0 : i32
    return %c0_i32 : i32
  }
  func.func @transform_3(%arg0: i32) -> i32 {
    %c0_i32 = arith.constant 0 : i32
    %c0_i32_0 = arith.constant 0 : i32
    return %c0_i32 : i32
  }
  func.func @transform_4(%arg0: i32) -> (i32, i32) {
    %c0_i32 = arith.constant 0 : i32
    %c0_i32_0 = arith.constant 0 : i32
    %c0_i32_1 = arith.constant 0 : i32
    return %c0_i32, %c0_i32_0 : i32, i32
  }
  func.func @transform_5(%arg0: i32) -> (i32, i32) {
    %c0_i32 = arith.constant 0 : i32
    %c0_i32_0 = arith.constant 0 : i32
    return %arg0, %c0_i32 : i32, i32
  }
  func.func @transform_6(%arg0: i32) -> (i32, i32) {
    %c0_i32 = arith.constant 0 : i32
    %c0_i32_0 = arith.constant 0 : i32
    return %arg0, %c0_i32 : i32, i32
  }
}

</mosaic_0001>

<bundles_post_ra>
// kernel: net_forward.1
= control target key start
LH: loop header
LB: loop body
LE: loop exit
PB: predicated region body
PF: predicated region fallthrough
CT: control target
= control target key end

     0   :  { %12 = vsyncpa [#allocation5], 0  ;;  %s3104_s0 = inlined_call_operand.vmem [shape: f32[16], index: 0, kind: input, shape index: {}]   ;;  %s3105_s1 = inlined_call_operand.vmem [shape: f32[8], index: 1, kind: input, shape index: {}]   ;;  %s3106_s2 = inlined_call_operand.vmem [shape: f32[8], index: 2, kind: input, shape index: {}]   ;;  %s3107_s3 = inlined_call_operand.<no memory space> [shape: f32[1], index: 3, kind: input, shape index: {}]   ;;  %s3108_s4 = inlined_call_operand.vmem [shape: f32[256,256], index: 4, kind: input, shape index: {}]   ;;  %s3109_s5 = inlined_call_operand.vmem [shape: f32[8,256], index: 5, kind: input, shape index: {}]   ;;  %s3110_s6 = inlined_call_operand.vmem [shape: f32[8,128], index: 6, kind: output, shape index: {}]  }
   0x1   :  { %13 = vsyncpa [#allocation7], 0  ;;  %s30_s23 = sshll.u32 %s3105_s1, 4  ;;  %s20_s26 = sshll.u32 %s3104_s0, 4  ;;  %s31_s23 = int_to_ptr.vmem [resolvable:$true] %s30_s23  ;;  %s21_s26 = int_to_ptr.vmem [resolvable:$true] %s20_s26 }
   0x2   :  { %s1972_s27 = scalar_lea.vmem %s31_s23, 16  ;;  %p1977_p1 = scmp.lt.s32.totalorder %s31_s23, %s31_s23 }
   0x3   :  { %p1973_p0 = scmp.ne.s32.totalorder %s31_s23, %s1972_s27  ;;  %p1978_p2 = scmp.lt.s32.totalorder %s1972_s27, %s1972_s27 }
   0x5   :  { %p1979_p3 = por %p1978_p2, %p1977_p1 }
   0x7   :  { %p1980_p4 = pnand %p1979_p3, %p1973_p0 }
   0x9   :  { %1983 = shalt.err (!%p1980_p4)
}
   0xa   :  { %s2012_s28 = smov [#allocation6]   ;;  %s1984_s29 = scalar_lea.vmem %s21_s26, 16 }
   0xb   :  { %33 = dma.vmem_to_smem %s31_s23, 16, %s2012_s28, [#allocation7]  }
   0xc   :  { %p1985_p5 = scmp.ne.s32.totalorder %s21_s26, %s1984_s29  ;;  %p1989_p6 = scmp.lt.s32.totalorder %s21_s26, %s21_s26 }
   0xd   :  { %p1990_p7 = scmp.lt.s32.totalorder %s1984_s29, %s1984_s29 }
   0xf   :  { %p1991_p8 = por %p1990_p7, %p1989_p6 }
  0x11   :  { %p1992_p9 = pnand %p1991_p8, %p1985_p5 }
  0x13   :  { %1995 = shalt.err (!%p1992_p9)
}
  0x14   :  { %s2013_s1 = smov [#allocation4]   ;;  %s40_s7 = sshll.u32 %s3106_s2, 4  ;;  %s41_s7 = int_to_ptr.vmem [resolvable:$true] %s40_s7 }
  0x15   :  { %23 = dma.vmem_to_smem %s21_s26, 16, %s2013_s1, [#allocation5]  }
  0x16   :  { %s1996_s8 = scalar_lea.vmem %s41_s7, 16  ;;  %p2001_p11 = scmp.lt.s32.totalorder %s41_s7, %s41_s7 }
  0x17   :  { %p1997_p10 = scmp.ne.s32.totalorder %s41_s7, %s1996_s8  ;;  %p2002_p12 = scmp.lt.s32.totalorder %s1996_s8, %s1996_s8 }
  0x19   :  { %p2003_p13 = por %p2002_p12, %p2001_p11 }
  0x1b   :  { %p2004_p0 = pnand %p2003_p13, %p1997_p10 }
  0x1d   :  { %2007 = shalt.err (!%p2004_p0)
}
  0x1e   :  { %s2014_s9 = smov [#allocation8]  }
  0x1f   :  { %43 = dma.vmem_to_smem %s41_s7, 16, %s2014_s9, [#allocation7]  }
  0x20   :  { %2008 = dma.done.wait [#allocation5], 16  }
  0x21   :  { %2009 = vsyncadd [#allocation5], 4294967280 }
  0x22   :  { %2010 = dma.done.wait [#allocation7], 32  }
  0x23   :  { %2011 = vsyncadd [#allocation7], 4294967264 }
  0x24   :  { %59 = sfence }
  0x25   :  { %v63_v0 = vld [vmem:[%s3108_s4 + $0x8] sm:$0xff]  ;;  %v65_v1 = vld [vmem:[%s3108_s4 + $0x18] sm:$0xff]  ;;  %v62_v2 = vld [vmem:[%s3108_s4] sm:$0xff]  ;;  %s3010_s30 = sld [smem:[#allocation4 + $0x2]]  ;;  %s3012_s7 = sld [smem:[#allocation4 + $0x4]] }
  0x26   :  { %v126_v3 = vand.u32 4294901760, %v63_v0  ;;  %v130_v4 = vand.u32 4294901760, %v65_v1  ;;  %v64_v5 = vld [vmem:[%s3108_s4 + $0x10] sm:$0xff]  ;;  %v128_v6 = vand.u32 4294901760, %v62_v2  ;;  %v67_v7 = vld [vmem:[%s3108_s4 + $0x28] sm:$0xff]  ;;  %v69_v8 = vld [vmem:[%s3108_s4 + $0x38] sm:$0xff] }
  0x27   :  { %v132_v9 = vand.u32 4294901760, %v64_v5  ;;  %v134_v10 = vand.u32 4294901760, %v67_v7  ;;  %v138_v11 = vand.u32 4294901760, %v69_v8  ;;  %v66_v12 = vld [vmem:[%s3108_s4 + $0x20] sm:$0xff]  ;;  %v68_v13 = vld [vmem:[%s3108_s4 + $0x30] sm:$0xff]  ;;  %v71_v14 = vld [vmem:[%s3108_s4 + $0x48] sm:$0xff] }
  0x28   :  { %v2086_v15 = vpack.c.bf16 %v130_v4, %v126_v3  ;;  %v2091_v16 = vld [vmem:[%s3108_s4 + $0x58] sm:$0xff]  ;;  %v2096_v17 = vld [vmem:[%s3108_s4 + $0x40] sm:$0xff]  ;;  %v2101_v18 = vld [vmem:[%s3108_s4 + $0x50] sm:$0xff]  ;;  %v136_v23 = vand.u32 4294901760, %v66_v12  ;;  %v140_v24 = vand.u32 4294901760, %v68_v13  ;;  %v142_v25 = vand.u32 4294901760, %v71_v14 }
  0x29   :  { %v2103_v19 = vpack.c.bf16 %v132_v9, %v128_v6  ;;  %v2105_v20 = vpack.c.bf16 %v138_v11, %v134_v10  ;;  %v75_v21 = vld [vmem:[%s3108_s4 + $0x68] sm:$0xff]  ;;  %v77_v22 = vld [vmem:[%s3108_s4 + $0x78] sm:$0xff]  ;;  %v146_v26 = vand.u32 4294901760, %v2091_v16  ;;  %v144_v27 = vand.u32 4294901760, %v2096_v17  ;;  %v74_v32 = vld [vmem:[%s3108_s4 + $0x60] sm:$0xff]  ;;  %s3014_s8 = sld [smem:[#allocation4 + $0x6]] }
  0x2a   :  { %3259 = vst [vmem:[#allocation11_spill] sm:$0xff] %v2086_v15  ;;  %1576 = vmatprep.subr.bf16.mxu1 %v2086_v15  ;;  %1768 = vmatprep.subr.bf16.mxu0 %v2086_v15  ;;  %v148_v28 = vand.u32 4294901760, %v2101_v18  ;;  %v2122_v29 = vpack.c.bf16 %v140_v24, %v136_v23  ;;  %v150_v30 = vand.u32 4294901760, %v75_v21  ;;  %v154_v31 = vand.u32 4294901760, %v77_v22  ;;  %v76_v33 = vld [vmem:[%s3108_s4 + $0x70] sm:$0xff]  ;;  %v79_v35 = vld [vmem:[%s3108_s4 + $0x88] sm:$0xff] }
  0x2b   :  { %3260 = vst [vmem:[#allocation12_spill] sm:$0xff] %v2103_v19  ;;  %3261 = vst [vmem:[#allocation13_spill] sm:$0xff] %v2105_v20  ;;  %1578 = vmatpush1.bf16.msra.mxu1 %v2103_v19  ;;  %1770 = vmatpush1.bf16.msra.mxu0 %v2103_v19  ;;  %v2130_v34 = vpack.c.bf16 %v146_v26, %v142_v25  ;;  %v81_v36 = vld [vmem:[%s3108_s4 + $0x98] sm:$0xff]  ;;  %v152_v38 = vand.u32 4294901760, %v74_v32  ;;  %v156_v39 = vand.u32 4294901760, %v76_v33  ;;  %v158_v41 = vand.u32 4294901760, %v79_v35 }
  0x2c   :  { %1580 = vmatprep.subr.bf16.mxu1 %v2105_v20  ;;  %1772 = vmatprep.subr.bf16.mxu0 %v2105_v20  ;;  %3262 = vst [vmem:[#allocation14_spill] sm:$0xff] %v2122_v29  ;;  %v2140_v37 = vpack.c.bf16 %v148_v28, %v144_v27  ;;  %v2144_v40 = vpack.c.bf16 %v154_v31, %v150_v30  ;;  %v162_v42 = vand.u32 4294901760, %v81_v36  ;;  %v78_v43 = vld [vmem:[%s3108_s4 + $0x80] sm:$0xff]  ;;  %v80_v44 = vld [vmem:[%s3108_s4 + $0x90] sm:$0xff]  ;;  %v83_v48 = vld [vmem:[%s3108_s4 + $0xa8] sm:$0xff]  ;;  %s3016_s9 = sld [smem:[#allocation4 + $0x8]] }
  0x2d   :  { %3263 = vst [vmem:[#allocation15_spill] sm:$0xff] %v2130_v34  ;;  %v2152_v45 = vsub.f32 %v63_v0, %v126_v3  ;;  %v2154_v46 = vsub.f32 %v65_v1, %v130_v4  ;;  %v2156_v47 = vsub.f32 %v62_v2, %v128_v6  ;;  %v85_v49 = vld [vmem:[%s3108_s4 + $0xb8] sm:$0xff]  ;;  %v2164_v50 = vsub.f32 %v64_v5, %v132_v9  ;;  %v82_v58 = vld [vmem:[%s3108_s4 + $0xa0] sm:$0xff]  ;;  %v84_v59 = vld [vmem:[%s3108_s4 + $0xb0] sm:$0xff]  ;;  %s3018_s10 = sld [smem:[#allocation4 + $0xa]]  ;;  %s3020_s11 = sld [smem:[#allocation4 + $0xc]] }
  0x2e   :  { %3264 = vst [vmem:[#allocation16_spill] sm:$0xff] %v2140_v37  ;;  %3265 = vst [vmem:[#allocation17_spill] sm:$0xff] %v2144_v40  ;;  %v2166_v51 = vsub.f32 %v67_v7, %v134_v10  ;;  %v2168_v52 = vsub.f32 %v69_v8, %v138_v11  ;;  %v2170_v53 = vsub.f32 %v66_v12, %v136_v23  ;;  %v160_v56 = vand.u32 4294901760, %v78_v43  ;;  %v87_v0 = vld [vmem:[%s3108_s4 + $0xc8] sm:$0xff]  ;;  %v89_v1 = vld [vmem:[%s3108_s4 + $0xd8] sm:$0xff]  ;;  %s3022_s2 = sld [smem:[#allocation4 + $0xe]] }
  0x2f   :  { %1582 = vmatpush1.bf16.msra.mxu1 %v2122_v29  ;;  %1774 = vmatpush1.bf16.msra.mxu0 %v2122_v29  ;;  %3266 = vst [vmem:[#allocation18_spill] sm:$0xff] %v2152_v45  ;;  %3267 = vst [vmem:[#allocation19_spill] sm:$0xff] %v2154_v46  ;;  %v2172_v54 = vsub.f32 %v68_v13, %v140_v24  ;;  %v2176_v55 = vpack.c.bf16 %v156_v39, %v152_v38  ;;  %v164_v57 = vand.u32 4294901760, %v80_v44  ;;  %v86_v10 = vld [vmem:[%s3108_s4 + $0xc0] sm:$0xff]  ;;  %v88_v11 = vld [vmem:[%s3108_s4 + $0xd0] sm:$0xff]  ;;  %s3024_s12 = sld [smem:[#allocation4 + $0x1]] }
  0x30   :  { %1584 = vmatprep.subr.bf16.mxu1 %v2130_v34  ;;  %1776 = vmatprep.subr.bf16.mxu0 %v2130_v34  ;;  %3268 = vst [vmem:[#allocation20_spill] sm:$0xff] %v2156_v47  ;;  %3269 = vst [vmem:[#allocation21_spill] sm:$0xff] %v2164_v50  ;;  %v2184_v60 = vsub.f32 %v71_v14, %v142_v25  ;;  %v2188_v61 = vpack.c.bf16 %v162_v42, %v158_v41  ;;  %v166_v62 = vand.u32 4294901760, %v83_v48  ;;  %v93_v23 = vld [vmem:[%s3108_s4 + $0xf8] sm:$0xff]  ;;  %s3026_s13 = sld [smem:[#allocation4 + $0x3]]  ;;  %s3028_s14 = sld [smem:[#allocation4 + $0x5]] }
  0x31   :  { %3270 = vst [vmem:[#allocation22_spill] sm:$0xff] %v2166_v51  ;;  %3271 = vst [vmem:[#allocation23_spill] sm:$0xff] %v2168_v52  ;;  %v170_v63 = vand.u32 4294901760, %v85_v49  ;;  %v2197_v2 = vsub.f32 %v2091_v16, %v146_v26  ;;  %v2200_v3 = vsub.f32 %v2096_v17, %v144_v27  ;;  %v2203_v4 = vsub.f32 %v2101_v18, %v148_v28  ;;  %v90_v28 = vld [vmem:[%s3108_s4 + $0xe0] sm:$0xff]  ;;  %s3030_s15 = sld [smem:[#allocation4 + $0x7]]  ;;  %s3032_s16 = sld [smem:[#allocation4 + $0x9]] }
  0x32   :  { %3272 = vst [vmem:[#allocation24_spill] sm:$0xff] %v2176_v55  ;;  %3273 = vst [vmem:[#allocation25_spill] sm:$0xff] %v2188_v61  ;;  %v2205_v5 = vsub.f32 %v75_v21, %v150_v30  ;;  %v2207_v6 = vsub.f32 %v77_v22, %v154_v31  ;;  %v2209_v7 = vsub.f32 %v74_v32, %v152_v38  ;;  %v168_v8 = vand.u32 4294901760, %v82_v58  ;;  %v91_v22 = vld [vmem:[%s3108_s4 + $0xe8] sm:$0xff]  ;;  %v92_v30 = vld [vmem:[%s3108_s4 + $0xf0] sm:$0xff]  ;;  %s3034_s17 = sld [smem:[#allocation4 + $0xb]] }
  0x33   :  { %1586 = vmatpush1.bf16.msra.mxu1 %v2140_v37  ;;  %1778 = vmatpush1.bf16.msra.mxu0 %v2140_v37  ;;  %3274 = vst [vmem:[#allocation26_spill] sm:$0xff] %v2200_v3  ;;  %3275 = vst [vmem:[#allocation27_spill] sm:$0xff] %v2203_v4  ;;  %v172_v9 = vand.u32 4294901760, %v84_v59  ;;  %v2218_v12 = vsub.f32 %v76_v33, %v156_v39  ;;  %v2221_v13 = vpack.c.bf16 %v164_v57, %v160_v56  ;;  %v97_v38 = vld [vmem:[%s3108_s4 + $0x118] sm:$0xff]  ;;  %v103_v37 = vld [vmem:[%s3108_s4 + $0x148] sm:$0xff]  ;;  %s3036_s18 = sld [smem:[#allocation4 + $0xd]] }
  0x34   :  { %1588 = vmatprep.subr.bf16.mxu1 %v2144_v40  ;;  %1780 = vmatprep.subr.bf16.mxu0 %v2144_v40  ;;  %3276 = vst [vmem:[#allocation28_spill] sm:$0xff] %v2205_v5  ;;  %3277 = vst [vmem:[#allocation29_spill] sm:$0xff] %v2209_v7  ;;  %v174_v14 = vand.u32 4294901760, %v87_v0  ;;  %v178_v16 = vand.u32 4294901760, %v89_v1  ;;  %v2224_v17 = vsub.f32 %v79_v35, %v158_v41  ;;  %v176_v26 = vand.u32 4294901760, %v86_v10  ;;  %s3038_s19 = sld [smem:[#allocation4 + $0xf]] }
  0x35   :  { %3278 = vst [vmem:[#allocation30_spill] sm:$0xff] %v2218_v12  ;;  %3279 = vst [vmem:[#allocation31_spill] sm:$0xff] %v2221_v13  ;;  %v2226_v18 = vsub.f32 %v81_v36, %v162_v42  ;;  %v2229_v21 = vpack.c.bf16 %v170_v63, %v166_v62  ;;  %v2237_v24 = vsub.f32 %v78_v43, %v160_v56  ;;  %v180_v27 = vand.u32 4294901760, %v88_v11  ;;  %v95_v36 = vld [vmem:[%s3108_s4 + $0x108] sm:$0xff]  ;;  %s3040_s20 = sld [smem:[#allocation6]]  ;;  %s3042_s21 = sld [smem:[#allocation6 + $0x1]] }
  0x36   :  { %3280 = vst [vmem:[#allocation32_spill] sm:$0xff] %v2224_v17  ;;  %v2239_v25 = vsub.f32 %v80_v44, %v164_v57  ;;  %v2247_v31 = vsub.f32 %v83_v48, %v166_v62  ;;  %v2249_v32 = vsub.f32 %v85_v49, %v170_v63  ;;  %v2251_v33 = vpack.c.bf16 %v172_v9, %v168_v8  ;;  %v94_v44 = vld [vmem:[%s3108_s4 + $0x100] sm:$0xff]  ;;  %v96_v48 = vld [vmem:[%s3108_s4 + $0x110] sm:$0xff]  ;;  %v101_v62 = vld [vmem:[%s3108_s4 + $0x138] sm:$0xff]  ;;  %s3044_s22 = sld [smem:[#allocation6 + $0x2]]  ;;  %s3046_s23 = sld [smem:[#allocation6 + $0x3]] }
  0x37   :  { %1590 = vmatpush1.bf16.msra.mxu1 %v2176_v55  ;;  %1782 = vmatpush1.bf16.msra.mxu0 %v2176_v55  ;;  %3281 = vst [vmem:[#allocation33_spill] sm:$0xff] %v2226_v18  ;;  %3282 = vst [vmem:[#allocation34_spill] sm:$0xff] %v2229_v21  ;;  %v2253_v35 = vsub.f32 %v82_v58, %v168_v8  ;;  %v2263_v39 = vsub.f32 %v84_v59, %v172_v9  ;;  %v182_v42 = vand.u32 4294901760, %v91_v22  ;;  %v99_v59 = vld [vmem:[%s3108_s4 + $0x128] sm:$0xff]  ;;  %s3065_s24 = sld [smem:[#allocation6 + $0x4]]  ;;  %s3072_s25 = sld [smem:[#allocation6 + $0x5]] }
  0x38   :  { %1592 = vmatprep.subr.bf16.mxu1 %v2188_v61  ;;  %1784 = vmatprep.subr.bf16.mxu0 %v2188_v61  ;;  %3283 = vst [vmem:[#allocation35_spill] sm:$0xff] %v2237_v24  ;;  %3284 = vst [vmem:[#allocation36_spill] sm:$0xff] %v2239_v25  ;;  %v2265_v41 = vpack.c.bf16 %v178_v16, %v174_v14  ;;  %v186_v43 = vand.u32 4294901760, %v93_v23  ;;  %v2275_v49 = vsub.f32 %v87_v0, %v174_v14  ;;  %v98_v0 = vld [vmem:[%s3108_s4 + $0x120] sm:$0xff]  ;;  %s3074_s26 = sld [smem:[#allocation8 + $0x1]]  ;;  %s3076_s27 = sld [smem:[#allocation6 + $0x6]] }
  0x39   :  { %3285 = vst [vmem:[#allocation37_spill] sm:$0xff] %v2247_v31  ;;  %3286 = vst [vmem:[#allocation38_spill] sm:$0xff] %v2249_v32  ;;  %v2277_v56 = vsub.f32 %v89_v1, %v178_v16  ;;  %v184_v57 = vand.u32 4294901760, %v90_v28  ;;  %v188_v58 = vand.u32 4294901760, %v92_v30  ;;  %v2285_v63 = vpack.c.bf16 %v180_v27, %v176_v26  ;;  %v100_v1 = vld [vmem:[%s3108_s4 + $0x130] sm:$0xff]  ;;  %s3078_s28 = sld [smem:[#allocation8 + $0x2]] }
  0x3a   :  { %3287 = vst [vmem:[#allocation39_spill] sm:$0xff] %v2251_v33  ;;  %3288 = vst [vmem:[#allocation40_spill] sm:$0xff] %v2253_v35  ;;  %v2287_v8 = vsub.f32 %v86_v10, %v176_v26  ;;  %v190_v9 = vand.u32 4294901760, %v95_v36  ;;  %v2295_v14 = vsub.f32 %v88_v11, %v180_v27  ;;  %v2297_v16 = vsub.f32 %v91_v22, %v182_v42  ;;  %v105_v11 = vld [vmem:[%s3108_s4 + $0x158] sm:$0xff]  ;;  %s3080_s29 = sld [smem:[#allocation6 + $0x7]]  ;;  %s3082_s1 = sld [smem:[#allocation8 + $0x3]] }
  0x3b   :  { %1594 = vmatpush1.bf16.msra.mxu1 %v2221_v13  ;;  %1786 = vmatpush1.bf16.msra.mxu0 %v2221_v13  ;;  %3289 = vst [vmem:[#allocation41_spill] sm:$0xff] %v2263_v39  ;;  %3290 = vst [vmem:[#allocation42_spill] sm:$0xff] %v2265_v41  ;;  %v192_v13 = vand.u32 4294901760, %v94_v44  ;;  %v196_v61 = vand.u32 4294901760, %v96_v48  ;;  %v2301_v10 = vpack.c.bf16 %v186_v43, %v182_v42  ;;  %v198_v55 = vand.u32 4294901760, %v99_v59  ;;  %s3084_s0 = sld [smem:[#allocation8 + $0x4]] }
  0x3c   :  { %1596 = vmatprep.subr.bf16.mxu1 %v2229_v21  ;;  %1788 = vmatprep.subr.bf16.mxu0 %v2229_v21  ;;  %3291 = vst [vmem:[#allocation43_spill] sm:$0xff] %v2275_v49  ;;  %3292 = vst [vmem:[#allocation44_spill] sm:$0xff] %v2277_v56  ;;  %v194_v21 = vand.u32 4294901760, %v97_v38  ;;  %v2303_v26 = vsub.f32 %v93_v23, %v186_v43  ;;  %v202_v40 = vand.u32 4294901760, %v101_v62  ;;  %v200_v23 = vand.u32 4294901760, %v98_v0  ;;  %v102_v43 = vld [vmem:[%s3108_s4 + $0x140] sm:$0xff] }
  0x3d   :  { %3293 = vst [vmem:[#allocation45_spill] sm:$0xff] %v2285_v63  ;;  %3294 = vst [vmem:[#allocation46_spill] sm:$0xff] %v2287_v8  ;;  %v2313_v22 = vpack.c.bf16 %v188_v58, %v184_v57  ;;  %v2315_v27 = vsub.f32 %v90_v28, %v184_v57  ;;  %v204_v42 = vand.u32 4294901760, %v100_v1  ;;  %v2323_v34 = vsub.f32 %v92_v30, %v188_v58  ;;  %v109_v30 = vld [vmem:[%s3108_s4 + $0x178] sm:$0xff]  ;;  %v108_v58 = vld [vmem:[%s3108_s4 + $0x170] sm:$0xff] }
  0x3e   :  { %3295 = vst [vmem:[#allocation47_spill] sm:$0xff] %v2295_v14  ;;  %3296 = vst [vmem:[#allocation48_spill] sm:$0xff] %v2297_v16  ;;  %v2325_v29 = vpack.c.bf16 %v194_v21, %v190_v9  ;;  %v2327_v20 = vsub.f32 %v95_v36, %v190_v9  ;;  %v2331_v28 = vpack.c.bf16 %v196_v61, %v192_v13  ;;  %v206_v19 = vand.u32 4294901760, %v103_v37 }
  0x3f   :  { %1598 = vmatpush1.bf16.msra.mxu1 %v2251_v33  ;;  %1790 = vmatpush1.bf16.msra.mxu0 %v2251_v33  ;;  %3297 = vst [vmem:[#allocation49_spill] sm:$0xff] %v2301_v10  ;;  %3298 = vst [vmem:[#allocation50_spill] sm:$0xff] %v2303_v26  ;;  %v104_v33 = vld [vmem:[%s3108_s4 + $0x150] sm:$0xff]  ;;  %v2333_v57 = vsub.f32 %v94_v44, %v192_v13  ;;  %v210_v15 = vand.u32 4294901760, %v105_v11  ;;  %v2345_v36 = vpack.c.bf16 %v202_v40, %v198_v55  ;;  %v106_v44 = vld [vmem:[%s3108_s4 + $0x160] sm:$0xff] }
  0x40   :  { %1600 = vmatprep.subr.bf16.mxu1 %v2265_v41  ;;  %1792 = vmatprep.subr.bf16.mxu0 %v2265_v41  ;;  %3299 = vst [vmem:[#allocation51_spill] sm:$0xff] %v2313_v22  ;;  %3300 = vst [vmem:[#allocation52_spill] sm:$0xff] %v2315_v27  ;;  %v2329_v41 = vsub.f32 %v97_v38, %v194_v21  ;;  %v107_v27 = vld [vmem:[%s3108_s4 + $0x168] sm:$0xff]  ;;  %v2343_v21 = vsub.f32 %v96_v48, %v196_v61  ;;  %v208_v13 = vand.u32 4294901760, %v102_v43 }
  0x41   :  { %3301 = vst [vmem:[#allocation53_spill] sm:$0xff] %v2323_v34  ;;  %3302 = vst [vmem:[#allocation54_spill] sm:$0xff] %v2325_v29  ;;  %v212_v38 = vand.u32 4294901760, %v104_v33  ;;  %v2355_v9 = vsub.f32 %v99_v59, %v198_v55  ;;  %v2357_v61 = vsub.f32 %v101_v62, %v202_v40  ;;  %v2359_v48 = vpack.c.bf16 %v204_v42, %v200_v23  ;;  %v110_v40 = vld [vmem:[%s3108_s4 + $0x180] sm:$0xff]  ;;  %v112_v55 = vld [vmem:[%s3108_s4 + $0x190] sm:$0xff] }
  0x42   :  { %3303 = vst [vmem:[#allocation55_spill] sm:$0xff] %v2327_v20  ;;  %3304 = vst [vmem:[#allocation56_spill] sm:$0xff] %v2329_v41  ;;  %v2369_v41 = vsub.f32 %v100_v1, %v204_v42  ;;  %v214_v20 = vand.u32 4294901760, %v107_v27  ;;  %v2377_v59 = vpack.c.bf16 %v210_v15, %v206_v19  ;;  %v2379_v62 = vsub.f32 %v103_v37, %v206_v19  ;;  %v117_v1 = vld [vmem:[%s3108_s4 + $0x1b8] sm:$0xff] }
  0x43   :  { %3305 = vst [vmem:[#allocation57_spill] sm:$0xff] %v2331_v28  ;;  %3306 = vst [vmem:[#allocation58_spill] sm:$0xff] %v2333_v57  ;;  %1602 = vmatpush1.bf16.msra.mxu1 %v2285_v63  ;;  %1794 = vmatpush1.bf16.msra.mxu0 %v2285_v63  ;;  %v111_v63 = vld [vmem:[%s3108_s4 + $0x188] sm:$0xff]  ;;  %v2367_v57 = vsub.f32 %v98_v0, %v200_v23  ;;  %v2389_v23 = vsub.f32 %v105_v11, %v210_v15  ;;  %v228_v34 = vand.u32 4294901760, %v112_v55 }
  0x44   :  { %3307 = vst [vmem:[#allocation59_spill] sm:$0xff] %v2343_v21  ;;  %3308 = vst [vmem:[#allocation60_spill] sm:$0xff] %v2345_v36  ;;  %1604 = vmatprep.subr.bf16.mxu1 %v2301_v10  ;;  %1796 = vmatprep.subr.bf16.mxu0 %v2301_v10  ;;  %v113_v21 = vld [vmem:[%s3108_s4 + $0x198] sm:$0xff]  ;;  %v218_v10 = vand.u32 4294901760, %v109_v30  ;;  %v115_v0 = vld [vmem:[%s3108_s4 + $0x1a8] sm:$0xff]  ;;  %v2391_v42 = vpack.c.bf16 %v212_v38, %v208_v13  ;;  %v222_v19 = vand.u32 4294901760, %v111_v63 }
  0x45   :  { %3309 = vst [vmem:[#allocation61_spill] sm:$0xff] %v2355_v9  ;;  %3310 = vst [vmem:[#allocation62_spill] sm:$0xff] %v2357_v61  ;;  %v216_v61 = vand.u32 4294901760, %v106_v44  ;;  %v220_v9 = vand.u32 4294901760, %v108_v58  ;;  %v226_v37 = vand.u32 4294901760, %v113_v21  ;;  %v2401_v16 = vsub.f32 %v107_v27, %v214_v20 }
  0x46   :  { %3311 = vst [vmem:[#allocation63_spill] sm:$0xff] %v2359_v48  ;;  %3312 = vst [vmem:[#allocation64_spill] sm:$0xff] %v2367_v57  ;;  %v224_v57 = vand.u32 4294901760, %v110_v40  ;;  %v2399_v26 = vpack.c.bf16 %v218_v10, %v214_v20  ;;  %v230_v15 = vand.u32 4294901760, %v115_v0  ;;  %v234_v11 = vand.u32 4294901760, %v117_v1  ;;  %v61_v20 = vld [vmem:[%s3109_s5 + $0x8] sm:$0xff] }
  0x47   :  { %3313 = vst [vmem:[#allocation65_spill] sm:$0xff] %v2369_v41  ;;  %3314 = vst [vmem:[#allocation66_spill] sm:$0xff] %v2377_v59  ;;  %1606 = vmatpush1.bf16.msra.mxu1 %v2313_v22  ;;  %1798 = vmatpush1.bf16.msra.mxu0 %v2313_v22  ;;  %v2397_v41 = vsub.f32 %v104_v33, %v212_v38  ;;  %v114_v22 = vld [vmem:[%s3108_s4 + $0x1a0] sm:$0xff]  ;;  %v2411_v33 = vpack.c.bf16 %v220_v9, %v216_v61 }
  0x48   :  { %3315 = vst [vmem:[#allocation67_spill] sm:$0xff] %v2379_v62  ;;  %3316 = vst [vmem:[#allocation68_spill] sm:$0xff] %v2389_v23  ;;  %1608 = vmatprep.subr.bf16.mxu1 %v2325_v29  ;;  %1800 = vmatprep.subr.bf16.mxu0 %v2325_v29  ;;  %v2395_v62 = vsub.f32 %v102_v43, %v208_v13  ;;  %v116_v29 = vld [vmem:[%s3108_s4 + $0x1b0] sm:$0xff]  ;;  %v2409_v43 = vsub.f32 %v109_v30, %v218_v10  ;;  %v119_v30 = vld [vmem:[%s3108_s4 + $0x1c8] sm:$0xff] }
  0x49   :  { %3317 = vst [vmem:[#allocation69_spill] sm:$0xff] %v2391_v42  ;;  %3319 = vst [vmem:[#allocation71_spill] sm:$0xff] %v2397_v41  ;;  %v2413_v13 = vsub.f32 %v106_v44, %v216_v61  ;;  %v2415_v38 = vsub.f32 %v108_v58, %v220_v9  ;;  %v2422_v27 = vpack.c.bf16 %v226_v37, %v222_v19  ;;  %v121_v44 = vld [vmem:[%s3108_s4 + $0x1d8] sm:$0xff]  ;;  %v60_v58 = vld [vmem:[%s3109_s5] sm:$0xff]  ;;  %v232_v9 = vand.u32 4294901760, %v114_v22  ;;  %s3067_s5 = sld [smem:[#allocation8]] }
  0x4a   :  { %3318 = vst [vmem:[#allocation70_spill] sm:$0xff] %v2395_v62  ;;  %3320 = vst [vmem:[#allocation72_spill] sm:$0xff] %v2399_v26  ;;  %v2426_v10 = vsub.f32 %v113_v21, %v226_v37  ;;  %v2441_v21 = vsub.f32 %v110_v40, %v224_v57  ;;  %v236_v61 = vand.u32 4294901760, %v116_v29  ;;  %v120_v37 = vld [vmem:[%s3108_s4 + $0x1d0] sm:$0xff]  ;;  %v238_v40 = vand.u32 4294901760, %v119_v30 }
  0x4b   :  { %3321 = vst [vmem:[#allocation73_spill] sm:$0xff] %v2401_v16  ;;  %3322 = vst [vmem:[#allocation74_spill] sm:$0xff] %v2409_v43  ;;  %1610 = vmatpush1.bf16.msra.mxu1 %v2331_v28  ;;  %1802 = vmatpush1.bf16.msra.mxu0 %v2331_v28  ;;  %v2424_v16 = vsub.f32 %v111_v63, %v222_v19  ;;  %v2439_v63 = vpack.c.bf16 %v228_v34, %v224_v57  ;;  %v118_v19 = vld [vmem:[%s3108_s4 + $0x1c0] sm:$0xff] }
  0x4c   :  { %3323 = vst [vmem:[#allocation75_spill] sm:$0xff] %v2411_v33  ;;  %3324 = vst [vmem:[#allocation76_spill] sm:$0xff] %v2413_v13  ;;  %1612 = vmatprep.subr.bf16.mxu1 %v2345_v36  ;;  %1804 = vmatprep.subr.bf16.mxu0 %v2345_v36  ;;  %v2449_v28 = vsub.f32 %v112_v55, %v228_v34  ;;  %v2455_v36 = vand.u32 4294901760, %v61_v20  ;;  %v2457_v57 = vsub.f32 %v117_v1, %v234_v11 }
  0x4d   :  { %3325 = vst [vmem:[#allocation77_spill] sm:$0xff] %v2415_v38  ;;  %3326 = vst [vmem:[#allocation78_spill] sm:$0xff] %v2422_v27  ;;  %v2459_v38 = vand.u32 4294901760, %v60_v58  ;;  %v2463_v13 = vsub.f32 %v114_v22, %v232_v9  ;;  %v240_v34 = vand.u32 4294901760, %v118_v19  ;;  %v244_v55 = vand.u32 4294901760, %v120_v37  ;;  %v125_v22 = vld [vmem:[%s3108_s4 + $0x1f8] sm:$0xff] }
  0x4e   :  { %3327 = vst [vmem:[#allocation79_spill] sm:$0xff] %v2424_v16  ;;  %3328 = vst [vmem:[#allocation80_spill] sm:$0xff] %v2426_v10  ;;  %v2451_v10 = vpack.c.bf16 %v234_v11, %v230_v15  ;;  %v2453_v16 = vsub.f32 %v115_v0, %v230_v15  ;;  %v123_v0 = vld [vmem:[%s3108_s4 + $0x1e8] sm:$0xff]  ;;  %v2469_v15 = vsub.f32 %v61_v20, %v2455_v36  ;;  %v285_v20 = vand.u32 4294901760, %v2154_v46 }
  0x4f   :  { %3329 = vst [vmem:[#allocation81_spill] sm:$0xff] %v2439_v63  ;;  %3330 = vst [vmem:[#allocation82_spill] sm:$0xff] %v2441_v21  ;;  %v242_v21 = vand.u32 4294901760, %v121_v44  ;;  %1614 = vmatpush1.bf16.msra.mxu1 %v2359_v48  ;;  %1806 = vmatpush1.bf16.msra.mxu0 %v2359_v48  ;;  %v2473_v1 = vpack.c.bf16 %v236_v61, %v232_v9  ;;  %v2475_v11 = vsub.f32 %v116_v29, %v236_v61 }
  0x50   :  { %3331 = vst [vmem:[#allocation83_spill] sm:$0xff] %v2449_v28  ;;  %3332 = vst [vmem:[#allocation84_spill] sm:$0xff] %v2451_v10  ;;  %1616 = vmatprep.subr.bf16.mxu1 %v2377_v59  ;;  %1808 = vmatprep.subr.bf16.mxu0 %v2377_v59  ;;  %v2477_v48 = vsub.f32 %v119_v30, %v238_v40  ;;  %v291_v59 = vand.u32 4294901760, %v2164_v50  ;;  %v246_v30 = vand.u32 4294901760, %v123_v0  ;;  %v122_v28 = vld [vmem:[%s3108_s4 + $0x1e0] sm:$0xff] }
  0x51   :  { %3333 = vst [vmem:[#allocation85_spill] sm:$0xff] %v2453_v16  ;;  %3334 = vst [vmem:[#allocation86_spill] sm:$0xff] %v2455_v36  ;;  %v279_v16 = vand.u32 4294901760, %v2156_v47  ;;  %v2487_v9 = vpack.c.bf16 %v242_v21, %v238_v40  ;;  %v2489_v29 = vsub.f32 %v121_v44, %v242_v21  ;;  %v2492_v61 = vsub.f32 %v60_v58, %v2459_v38  ;;  %v124_v44 = vld [vmem:[%s3108_s4 + $0x1f0] sm:$0xff]  ;;  %s3008_s4 = sld [smem:[#allocation4]] }
  0x52   :  { %3335 = vst [vmem:[#allocation87_spill] sm:$0xff] %v2457_v57  ;;  %3336 = vst [vmem:[#allocation88_spill] sm:$0xff] %v2459_v38  ;;  %v256_v57 = vand.u32 4294901760, %v2469_v15  ;;  %v297_v58 = vand.u32 4294901760, %v2166_v51  ;;  %v2508_v40 = vsub.f32 %v118_v19, %v240_v34  ;;  %v286_v41 = vsub.f32 %v2154_v46, %v285_v20 }
  0x53   :  { %3337 = vst [vmem:[#allocation89_spill] sm:$0xff] %v2463_v13  ;;  %3338 = vst [vmem:[#allocation90_spill] sm:$0xff] %v2469_v15  ;;  %v273_v13 = vand.u32 4294901760, %v2152_v45  ;;  %1618 = vmatpush1.bf16.msra.mxu1 %v2391_v42  ;;  %1810 = vmatpush1.bf16.msra.mxu0 %v2391_v42  ;;  %v2510_v42 = vsub.f32 %v120_v37, %v244_v55  ;;  %v292_v62 = vsub.f32 %v2164_v50, %v291_v59 }
  0x54   :  { %3339 = vst [vmem:[#allocation91_spill] sm:$0xff] %v2473_v1  ;;  %3340 = vst [vmem:[#allocation92_spill] sm:$0xff] %v2475_v11  ;;  %v250_v11 = vand.u32 4294901760, %v125_v22  ;;  %v257_v21 = vsub.f32 %v2469_v15, %v256_v57  ;;  %1620 = vmatprep.subr.bf16.mxu1 %v2399_v26  ;;  %1812 = vmatprep.subr.bf16.mxu0 %v2399_v26  ;;  %v280_v15 = vsub.f32 %v2156_v47, %v279_v16 }
  0x55   :  { %3341 = vst [vmem:[#allocation93_spill] sm:$0xff] %v2477_v48  ;;  %3342 = vst [vmem:[#allocation94_spill] sm:$0xff] %v2487_v9  ;;  %v2496_v48 = vpack.c.bf16 %v244_v55, %v240_v34  ;;  %v274_v38 = vsub.f32 %v2152_v45, %v273_v13  ;;  %998 = vmatprep.mubr.f32.mxu0 %v256_v57  ;;  %v2517_v23 = vsub.f32 %v123_v0, %v246_v30 }
  0x56   :  { %3343 = vst [vmem:[#allocation95_spill] sm:$0xff] %v2489_v29  ;;  %3344 = vst [vmem:[#allocation96_spill] sm:$0xff] %v2492_v61  ;;  %v309_v29 = vand.u32 4294901760, %v2168_v52  ;;  %v258_v43 = vand.u32 4294901760, %v257_v21  ;;  %v248_v36 = vand.u32 4294901760, %v122_v28  ;;  %v252_v26 = vand.u32 4294901760, %v124_v44 }
  0x57   :  { %3345 = vst [vmem:[#allocation97_spill] sm:$0xff] %v2496_v48  ;;  %1622 = vmatpush1.bf16.msra.mxu1 %v2411_v33  ;;  %1814 = vmatpush1.bf16.msra.mxu0 %v2411_v33  ;;  %v298_v37 = vsub.f32 %v2166_v51, %v297_v58  ;;  %v303_v57 = vand.u32 4294901760, %v2170_v53  ;;  %v315_v55 = vand.u32 4294901760, %v2172_v54  ;;  %v2528_v0 = vpack.c.bf16 %v250_v11, %v246_v30 }
  0x58   :  { %v310_v34 = vsub.f32 %v2168_v52, %v309_v29  ;;  %1624 = vmatprep.subr.bf16.mxu1 %v2422_v27  ;;  %1816 = vmatprep.subr.bf16.mxu0 %v2422_v27  ;;  %v2530_v21 = vsub.f32 %v125_v22, %v250_v11  ;;  %v2532_v19 = vsub.f32 %v122_v28, %v248_v36  ;;  %v275_v33 = vand.u32 4294901760, %v274_v38 }
  0x59   :  { %3346 = vst [vmem:[#allocation98_spill] sm:$0xff] %v2528_v0  ;;  %259 = vmatprep.mubr.f32.mxu1 %v258_v43  ;;  %v287_v50 = vand.u32 4294901760, %v286_v41  ;;  %v281_v51 = vand.u32 4294901760, %v280_v15  ;;  %v293_v47 = vand.u32 4294901760, %v292_v62  ;;  %v2534_v52 = vpack.c.bf16 %v252_v26, %v248_v36 }
  0x5a   :  { %3347 = vst [vmem:[#allocation99_spill] sm:$0xff] %v2532_v19  ;;  %v3349_v46 = vand.u32 4294901760, %v2492_v61  ;;  %v321_v27 = vand.u32 4294901760, %v2184_v60  ;;  %v333_v30 = vand.u32 4294901760, %v2197_v2  ;;  %v299_v28 = vand.u32 4294901760, %v298_v37 }
  0x5b   :  { %3348 = vst [vmem:[#allocation100_spill] sm:$0xff] %v2534_v52  ;;  %1626 = vmatpush1.bf16.msra.mxu1 %v2439_v63  ;;  %1818 = vmatpush1.bf16.msra.mxu0 %v2439_v63  ;;  %v311_v43 = vand.u32 4294901760, %v310_v34  ;;  %v304_v41 = vsub.f32 %v2170_v53, %v303_v57  ;;  %v316_v36 = vsub.f32 %v2172_v54, %v315_v55  ;;  %v327_v15 = vand.u32 4294901760, %v2200_v3 }
  0x5c   :  { %v2539_v45 = vsub.f32 %v2492_v61, %v3349_v46  ;;  %1628 = vmatprep.subr.bf16.mxu1 %v2451_v10  ;;  %1820 = vmatprep.subr.bf16.mxu0 %v2451_v10  ;;  %v2549_v46 = vsub.f32 %v124_v44, %v252_v26  ;;  %v1831_v62 = vpack.c.bf16 %v285_v20, %v273_v13  ;;  %v339_v34 = vand.u32 4294901760, %v2203_v4 }
  0x5d   :  { %v2551_v38 = vpack.c.bf16 %v291_v59, %v279_v16  ;;  %v1639_v11 = vpack.c.bf16 %v287_v50, %v275_v33  ;;  %v2554_v22 = vpack.c.bf16 %v293_v47, %v281_v51  ;;  %v2556_v37 = vpack.c.bf16 %v309_v29, %v297_v58 }
  0x5e   :  { %3350 = vst [vmem:[#allocation101_spill] sm:$0xff] %v2549_v46  ;;  %v264_v63 = vand.u32 4294901760, %v2539_v45  ;;  %v2560_v19 = vpack.c.bf16 %v315_v55, %v303_v57  ;;  %v322_v10 = vsub.f32 %v2184_v60, %v321_v27  ;;  %v334_v26 = vsub.f32 %v2197_v2, %v333_v30 }
  0x5f   :  { %1630 = vmatpush1.bf16.msra.mxu1 %v2473_v1  ;;  %1822 = vmatpush1.bf16.msra.mxu0 %v2473_v1  ;;  %v2566_v16 = vpack.c.bf16 %v311_v43, %v299_v28  ;;  %v305_v47 = vand.u32 4294901760, %v304_v41  ;;  %v317_v50 = vand.u32 4294901760, %v316_v36  ;;  %v345_v51 = vand.u32 4294901760, %v2205_v5 }
  0x60   :  { %1632 = vmatprep.subr.bf16.mxu1 %v2487_v9  ;;  %1824 = vmatprep.subr.bf16.mxu0 %v2487_v9  ;;  %v328_v45 = vsub.f32 %v2200_v3, %v327_v15  ;;  %v357_v59 = vand.u32 4294901760, %v2207_v6  ;;  %v351_v33 = vand.u32 4294901760, %v2209_v7  ;;  %v363_v13 = vand.u32 4294901760, %v2218_v12 }
  0x61   :  { %v340_v20 = vsub.f32 %v2203_v4, %v339_v34  ;;  %v369_v29 = vand.u32 4294901760, %v2224_v17  ;;  %v381_v44 = vand.u32 4294901760, %v2226_v18  ;;  %v375_v58 = vand.u32 4294901760, %v2237_v24 }
  0x62   :  { %v323_v57 = vand.u32 4294901760, %v322_v10  ;;  %v335_v55 = vand.u32 4294901760, %v334_v26  ;;  %v2579_v28 = vpack.c.bf16 %v333_v30, %v321_v27  ;;  %v387_v43 = vand.u32 4294901760, %v2239_v25 }
  0x63   :  { %1634 = vmatpush1.bf16.msra.mxu1 %v2496_v48  ;;  %1826 = vmatpush1.bf16.msra.mxu0 %v2496_v48  ;;  %v1645_v41 = vpack.c.bf16 %v317_v50, %v305_v47  ;;  %v346_v36 = vsub.f32 %v2205_v5, %v345_v51  ;;  %v393_v9 = vand.u32 4294901760, %v2247_v31  ;;  %v405_v1 = vand.u32 4294901760, %v2249_v32 }
  0x64   :  { %1636 = vmatprep.subr.bf16.mxu1 %v2528_v0  ;;  %1828 = vmatprep.subr.bf16.mxu0 %v2528_v0  ;;  %v329_v10 = vand.u32 4294901760, %v328_v45  ;;  %v358_v27 = vsub.f32 %v2207_v6, %v357_v59  ;;  %v352_v30 = vsub.f32 %v2209_v7, %v351_v33  ;;  %v364_v26 = vsub.f32 %v2218_v12, %v363_v13 }
  0x65   :  { %v341_v46 = vand.u32 4294901760, %v340_v20  ;;  %v370_v47 = vsub.f32 %v2224_v17, %v369_v29  ;;  %v382_v50 = vsub.f32 %v2226_v18, %v381_v44  ;;  %v376_v48 = vsub.f32 %v2237_v24, %v375_v58 }
  0x66   :  { %v1647_v5 = vpack.c.bf16 %v335_v55, %v323_v57  ;;  %v2595_v4 = vpack.c.bf16 %v339_v34, %v327_v15  ;;  %v388_v3 = vsub.f32 %v2239_v25, %v387_v43  ;;  %v399_v45 = vand.u32 4294901760, %v2253_v35 }
  0x67   :  { %1638 = vmatpush1.bf16.msra.mxu1 %v2534_v52  ;;  %1830 = vmatpush1.bf16.msra.mxu0 %v2534_v52  ;;  %v347_v0 = vand.u32 4294901760, %v346_v36  ;;  %v2601_v12 = vpack.c.bf16 %v357_v59, %v345_v51  ;;  %v394_v20 = vsub.f32 %v2247_v31, %v393_v9  ;;  %v406_v18 = vsub.f32 %v2249_v32, %v405_v1  ;;  %v3406_v31 = vld [vmem:[#allocation53_spill] sm:$0xff] }
  0x68   :  { %1640 = vmatprep.subr.bf16.mxu1 %v1639_v11  ;;  %1832 = vmatprep.subr.bf16.mxu0 %v1831_v62  ;;  %v359_v57 = vand.u32 4294901760, %v358_v27  ;;  %v353_v15 = vand.u32 4294901760, %v352_v30  ;;  %v365_v34 = vand.u32 4294901760, %v364_v26  ;;  %v411_v55 = vand.u32 4294901760, %v2263_v39  ;;  %v3423_v32 = vld [vmem:[#allocation77_spill] sm:$0xff] }
  0x69   :  { %v1649_v25 = vpack.c.bf16 %v341_v46, %v329_v10  ;;  %v371_v24 = vand.u32 4294901760, %v370_v47  ;;  %v383_v17 = vand.u32 4294901760, %v382_v50  ;;  %v377_v7 = vand.u32 4294901760, %v376_v48  ;;  %v3356_v50 = vld [vmem:[#allocation53_spill] sm:$0xff] }
  0x6a   :  { %265 = vmatmul.mubr.f32.vlgmr.msra.gmra.mrb[0].mxu1 %v264_v63  ;;  %v3351_v36 = vand.u32 4294901760, %v2492_v61  ;;  %v389_v51 = vand.u32 4294901760, %v388_v3  ;;  %v400_v59 = vsub.f32 %v2253_v35, %v399_v45  ;;  %v417_v52 = vand.u32 4294901760, %v2275_v49 }
  0x6b   :  { %v429_v62 = vand.u32 4294901760, %v2277_v56  ;;  %1642 = vmatpush1.bf16.msra.mxu1 %v2554_v22  ;;  %v1845_v11 = vpack.c.bf16 %v363_v13, %v351_v33  ;;  %v2613_v46 = vpack.c.bf16 %v381_v44, %v369_v29  ;;  %v395_v10 = vand.u32 4294901760, %v394_v20  ;;  %v3352_v33 = vld [vmem:[#allocation86_spill] sm:$0xff] }
  0x6c   :  { %1002 = vmatmul.mubr.f32.vlgmr.msra.gmra.mrb[0].mxu0 %v3351_v36  ;;  %v407_v48 = vand.u32 4294901760, %v406_v18  ;;  %1644 = vmatprep.subr.bf16.mxu1 %v2566_v16  ;;  %v1651_v3 = vpack.c.bf16 %v359_v57, %v347_v0  ;;  %v1653_v63 = vpack.c.bf16 %v365_v34, %v353_v15  ;;  %v412_v27 = vsub.f32 %v2263_v39, %v411_v55  ;;  %v3354_v13 = vld [vmem:[#allocation50_spill] sm:$0xff]  ;;  %v3358_v15 = vld [vmem:[#allocation56_spill] sm:$0xff] }
  0x6d   :  { %1834 = vmatpush1.bf16.msra.mxu0 %v2551_v38  ;;  %v423_v30 = vand.u32 4294901760, %v2287_v8  ;;  %v1655_v26 = vpack.c.bf16 %v383_v17, %v371_v24  ;;  %v2619_v47 = vpack.c.bf16 %v387_v43, %v375_v58  ;;  %v2621_v22 = vpack.c.bf16 %v405_v1, %v393_v9  ;;  %656 = vmatprep.mubr.f32.mxu1 %v3352_v33  ;;  %v3353_v1 = vld [vmem:[#allocation48_spill] sm:$0xff] }
  0x6e   :  { %1836 = vmatprep.subr.bf16.mxu0 %v2556_v37  ;;  %v435_v38 = vand.u32 4294901760, %v2295_v14  ;;  %v2625_v18 = vpack.c.bf16 %v389_v51, %v377_v7  ;;  %v401_v16 = vand.u32 4294901760, %v400_v59  ;;  %v418_v37 = vsub.f32 %v2275_v49, %v417_v52  ;;  %1265 = vmatprep.mubr.f32.mxu0 %v3352_v33  ;;  %v3355_v58 = vld [vmem:[#allocation52_spill] sm:$0xff] }
  0x6f   :  { %v430_v0 = vsub.f32 %v2277_v56, %v429_v62  ;;  %1646 = vmatpush1.bf16.msra.mxu1 %v1645_v41  ;;  %v2631_v17 = vpack.c.bf16 %v407_v48, %v395_v10  ;;  %v2633_v24 = vpack.c.bf16 %v411_v55, %v399_v45  ;;  %v441_v9 = vand.u32 4294901760, %v3353_v1  ;;  %v3357_v45 = vld [vmem:[#allocation55_spill] sm:$0xff]  ;;  %v3363_v49 = vld [vmem:[#allocation64_spill] sm:$0xff] }
  0x70   :  { %v453_v29 = vand.u32 4294901760, %v3354_v13  ;;  %1648 = vmatprep.subr.bf16.mxu1 %v1647_v5  ;;  %v413_v7 = vand.u32 4294901760, %v412_v27  ;;  %v424_v44 = vsub.f32 %v2287_v8, %v423_v30  ;;  %v447_v43 = vand.u32 4294901760, %v3355_v58  ;;  %v3359_v5 = vld [vmem:[#allocation58_spill] sm:$0xff]  ;;  %v3422_v39 = vld [vmem:[#allocation76_spill] sm:$0xff] }
  0x71   :  { %1838 = vmatpush1.bf16.msra.mxu0 %v2560_v19  ;;  %v459_v41 = vand.u32 4294901760, %v3356_v50  ;;  %v2641_v20 = vpack.c.bf16 %v429_v62, %v417_v52  ;;  %v436_v19 = vsub.f32 %v2295_v14, %v435_v38  ;;  %v465_v57 = vand.u32 4294901760, %v3357_v45  ;;  %v3361_v62 = vld [vmem:[#allocation61_spill] sm:$0xff]  ;;  %v3362_v27 = vld [vmem:[#allocation62_spill] sm:$0xff] }
  0x72   :  { %1840 = vmatprep.subr.bf16.mxu0 %v2579_v28  ;;  %v477_v34 = vand.u32 4294901760, %v3358_v15  ;;  %v419_v55 = vand.u32 4294901760, %v418_v37  ;;  %v431_v36 = vand.u32 4294901760, %v430_v0  ;;  %v471_v51 = vand.u32 4294901760, %v3359_v5  ;;  %v3360_v28 = vld [vmem:[#allocation59_spill] sm:$0xff] }
  0x73   :  { %v483_v59 = vand.u32 4294901760, %v3360_v28  ;;  %1650 = vmatpush1.bf16.msra.mxu1 %v1649_v25  ;;  %v442_v10 = vsub.f32 %v3353_v1, %v441_v9  ;;  %v454_v52 = vsub.f32 %v3354_v13, %v453_v29  ;;  %v489_v48 = vand.u32 4294901760, %v3361_v62 }
  0x74   :  { %v501_v61 = vand.u32 4294901760, %v3362_v27  ;;  %1652 = vmatprep.subr.bf16.mxu1 %v1651_v3  ;;  %v1661_v37 = vpack.c.bf16 %v413_v7, %v401_v16  ;;  %v425_v0 = vand.u32 4294901760, %v424_v44  ;;  %v448_v33 = vsub.f32 %v3355_v58, %v447_v43 }
  0x75   :  { %1842 = vmatpush1.bf16.msra.mxu0 %v2595_v4  ;;  %v460_v14 = vsub.f32 %v3356_v50, %v459_v41  ;;  %v437_v25 = vand.u32 4294901760, %v436_v19  ;;  %v2656_v8 = vpack.c.bf16 %v435_v38, %v423_v30  ;;  %v466_v4 = vsub.f32 %v3357_v45, %v465_v57 }
  0x76   :  { %1844 = vmatprep.subr.bf16.mxu0 %v2601_v12  ;;  %v478_v13 = vsub.f32 %v3358_v15, %v477_v34  ;;  %v1663_v1 = vpack.c.bf16 %v431_v36, %v419_v55  ;;  %v472_v56 = vsub.f32 %v3359_v5, %v471_v51  ;;  %v484_v3 = vsub.f32 %v3360_v28, %v483_v59  ;;  %v3364_v36 = vld [vmem:[#allocation65_spill] sm:$0xff] }
  0x77   :  { %v495_v12 = vand.u32 4294901760, %v3363_v49  ;;  %1654 = vmatpush1.bf16.msra.mxu1 %v1653_v63  ;;  %v443_v16 = vand.u32 4294901760, %v442_v10  ;;  %v455_v7 = vand.u32 4294901760, %v454_v52  ;;  %v490_v44 = vsub.f32 %v3361_v62, %v489_v48  ;;  %v3365_v62 = vld [vmem:[#allocation67_spill] sm:$0xff] }
  0x78   :  { %v502_v30 = vsub.f32 %v3362_v27, %v501_v61  ;;  %1656 = vmatprep.subr.bf16.mxu1 %v1655_v26  ;;  %v1859_v38 = vpack.c.bf16 %v453_v29, %v441_v9  ;;  %v449_v19 = vand.u32 4294901760, %v448_v33  ;;  %v461_v55 = vand.u32 4294901760, %v460_v14  ;;  %v3366_v33 = vld [vmem:[#allocation68_spill] sm:$0xff] }
  0x79   :  { %1846 = vmatpush1.bf16.msra.mxu0 %v1845_v11  ;;  %v507_v5 = vand.u32 4294901760, %v3364_v36  ;;  %v1665_v15 = vpack.c.bf16 %v437_v25, %v425_v0  ;;  %v2667_v28 = vpack.c.bf16 %v459_v41, %v447_v43  ;;  %v467_v45 = vand.u32 4294901760, %v466_v4  ;;  %v3367_v43 = vld [vmem:[#allocation70_spill] sm:$0xff] }
  0x7a   :  { %1848 = vmatprep.subr.bf16.mxu0 %v2613_v46  ;;  %v479_v63 = vand.u32 4294901760, %v478_v13  ;;  %v473_v11 = vand.u32 4294901760, %v472_v56  ;;  %v485_v10 = vand.u32 4294901760, %v484_v3  ;;  %v496_v52 = vsub.f32 %v3363_v49, %v495_v12 }
  0x7b   :  { %v513_v50 = vand.u32 4294901760, %v3365_v62  ;;  %1658 = vmatpush1.bf16.msra.mxu1 %v2625_v18  ;;  %v1667_v46 = vpack.c.bf16 %v455_v7, %v443_v16  ;;  %v491_v26 = vand.u32 4294901760, %v490_v44  ;;  %v503_v14 = vand.u32 4294901760, %v502_v30  ;;  %v3372_v44 = vld [vmem:[#allocation77_spill] sm:$0xff] }
  0x7c   :  { %v525_v9 = vand.u32 4294901760, %v3366_v33  ;;  %1660 = vmatprep.subr.bf16.mxu1 %v2631_v17  ;;  %v1669_v13 = vpack.c.bf16 %v461_v55, %v449_v19  ;;  %v1863_v56 = vpack.c.bf16 %v477_v34, %v465_v57  ;;  %v508_v29 = vsub.f32 %v3364_v36, %v507_v5  ;;  %v3369_v57 = vld [vmem:[#allocation73_spill] sm:$0xff]  ;;  %v3373_v19 = vld [vmem:[#allocation79_spill] sm:$0xff] }
  0x7d   :  { %1850 = vmatpush1.bf16.msra.mxu0 %v2619_v47  ;;  %v519_v41 = vand.u32 4294901760, %v3367_v43  ;;  %v1671_v0 = vpack.c.bf16 %v479_v63, %v467_v45  ;;  %v2678_v25 = vpack.c.bf16 %v483_v59, %v471_v51  ;;  %v2680_v18 = vpack.c.bf16 %v501_v61, %v489_v48  ;;  %v3368_v47 = vld [vmem:[#allocation71_spill] sm:$0xff]  ;;  %v3370_v61 = vld [vmem:[#allocation74_spill] sm:$0xff]  ;;  %v3371_v48 = vld [vmem:[#allocation76_spill] sm:$0xff] }
  0x7e   :  { %1852 = vmatprep.subr.bf16.mxu0 %v2621_v22  ;;  %v531_v4 = vand.u32 4294901760, %v3368_v47  ;;  %v2683_v3 = vpack.c.bf16 %v485_v10, %v473_v11  ;;  %v497_v16 = vand.u32 4294901760, %v496_v52  ;;  %v2685_v7 = vpack.c.bf16 %v507_v5, %v495_v12  ;;  %v3374_v63 = vld [vmem:[#allocation80_spill] sm:$0xff]  ;;  %v3375_v52 = vld [vmem:[#allocation82_spill] sm:$0xff] }
  0x7f   :  { %v514_v22 = vsub.f32 %v3365_v62, %v513_v50  ;;  %1662 = vmatpush1.bf16.msra.mxu1 %v1661_v37  ;;  %v2689_v17 = vpack.c.bf16 %v503_v14, %v491_v26  ;;  %v526_v45 = vsub.f32 %v3366_v33, %v525_v9  ;;  %v537_v34 = vand.u32 4294901760, %v3369_v57  ;;  %v3376_v26 = vld [vmem:[#allocation83_spill] sm:$0xff]  ;;  %v3377_v14 = vld [vmem:[#allocation85_spill] sm:$0xff] }
  0x80   :  { %v549_v51 = vand.u32 4294901760, %v3370_v61  ;;  %1664 = vmatprep.subr.bf16.mxu1 %v1663_v1  ;;  %v509_v59 = vand.u32 4294901760, %v508_v29  ;;  %v520_v5 = vsub.f32 %v3367_v43, %v519_v41  ;;  %v543_v12 = vand.u32 4294901760, %v3371_v48 }
  0x81   :  { %1854 = vmatpush1.bf16.msra.mxu0 %v2633_v24  ;;  %v555_v37 = vand.u32 4294901760, %v3372_v44  ;;  %v2698_v30 = vpack.c.bf16 %v525_v9, %v513_v50  ;;  %v532_v24 = vsub.f32 %v3368_v47, %v531_v4  ;;  %v561_v55 = vand.u32 4294901760, %v3373_v19  ;;  %v3378_v47 = vld [vmem:[#allocation87_spill] sm:$0xff] }
  0x82   :  { %1856 = vmatprep.subr.bf16.mxu0 %v2641_v20  ;;  %v573_v11 = vand.u32 4294901760, %v3374_v63  ;;  %v515_v10 = vand.u32 4294901760, %v514_v22  ;;  %v567_v1 = vand.u32 4294901760, %v3375_v52  ;;  %v579_v20 = vand.u32 4294901760, %v3376_v26 }
  0x83   :  { %v585_v29 = vand.u32 4294901760, %v3377_v14  ;;  %1666 = vmatpush1.bf16.msra.mxu1 %v1665_v15  ;;  %v527_v43 = vand.u32 4294901760, %v526_v45  ;;  %v538_v50 = vsub.f32 %v3369_v57, %v537_v34  ;;  %v550_v9 = vsub.f32 %v3370_v61, %v549_v51 }
  0x84   :  { %v597_v33 = vand.u32 4294901760, %v3378_v47  ;;  %1668 = vmatprep.subr.bf16.mxu1 %v1667_v46  ;;  %v1677_v62 = vpack.c.bf16 %v509_v59, %v497_v16  ;;  %v521_v22 = vand.u32 4294901760, %v520_v5  ;;  %v544_v36 = vsub.f32 %v3371_v48, %v543_v12 }
  0x85   :  { %1858 = vmatpush1.bf16.msra.mxu0 %v2656_v8  ;;  %v556_v49 = vsub.f32 %v3372_v44, %v555_v37  ;;  %v533_v27 = vand.u32 4294901760, %v532_v24  ;;  %v2712_v58 = vpack.c.bf16 %v531_v4, %v519_v41  ;;  %v562_v8 = vsub.f32 %v3373_v19, %v561_v55  ;;  %v3379_v41 = vld [vmem:[#allocation89_spill] sm:$0xff] }
  0x86   :  { %1860 = vmatprep.subr.bf16.mxu0 %v1859_v38  ;;  %v574_v15 = vsub.f32 %v3374_v63, %v573_v11  ;;  %v568_v45 = vsub.f32 %v3375_v52, %v567_v1  ;;  %v580_v61 = vsub.f32 %v3376_v26, %v579_v20  ;;  %v586_v46 = vsub.f32 %v3377_v14, %v585_v29  ;;  %v3380_v52 = vld [vmem:[#allocation92_spill] sm:$0xff] }
  0x87   :  { %v598_v38 = vsub.f32 %v3378_v47, %v597_v33  ;;  %1670 = vmatpush1.bf16.msra.mxu1 %v1669_v13  ;;  %v1679_v16 = vpack.c.bf16 %v527_v43, %v515_v10  ;;  %v539_v59 = vand.u32 4294901760, %v538_v50  ;;  %v551_v5 = vand.u32 4294901760, %v550_v9 }
  0x88   :  { %v3252_v4 = vand.u32 4294901760, %v3379_v41  ;;  %1672 = vmatprep.subr.bf16.mxu1 %v1671_v0  ;;  %v1875_v24 = vpack.c.bf16 %v549_v51, %v537_v34  ;;  %v545_v63 = vand.u32 4294901760, %v544_v36  ;;  %v557_v19 = vand.u32 4294901760, %v556_v49 }
  0x89   :  { %1862 = vmatpush1.bf16.msra.mxu0 %v2667_v28  ;;  %v3251_v44 = vand.u32 4294901760, %v3380_v52  ;;  %v1681_v26 = vpack.c.bf16 %v533_v27, %v521_v22  ;;  %v2723_v48 = vpack.c.bf16 %v555_v37, %v543_v12  ;;  %v563_v14 = vand.u32 4294901760, %v562_v8  ;;  %v3381_v27 = vld [vmem:[#allocation93_spill] sm:$0xff] }
  0x8a   :  { %1864 = vmatprep.subr.bf16.mxu0 %v1863_v56  ;;  %v575_v47 = vand.u32 4294901760, %v574_v15  ;;  %v569_v13 = vand.u32 4294901760, %v568_v45  ;;  %v581_v57 = vand.u32 4294901760, %v580_v61  ;;  %v587_v28 = vand.u32 4294901760, %v586_v46  ;;  %v3389_v46 = vld [vmem:[#allocation26_spill] sm:$0xff] }
  0x8b   :  { %v599_v43 = vand.u32 4294901760, %v598_v38  ;;  %1674 = vmatpush1.bf16.msra.mxu1 %v2683_v3  ;;  %v1683_v0 = vpack.c.bf16 %v551_v5, %v539_v59  ;;  %v2727_v56 = vpack.c.bf16 %v573_v11, %v561_v55  ;;  %v2732_v49 = vsub.f32 %v3379_v41, %v3252_v4  ;;  %v3390_v38 = vld [vmem:[#allocation27_spill] sm:$0xff]  ;;  %v3391_v5 = vld [vmem:[#allocation28_spill] sm:$0xff] }
  0x8c   :  { %v3250_v36 = vand.u32 4294901760, %v3381_v27  ;;  %1676 = vmatprep.subr.bf16.mxu1 %v2689_v17  ;;  %v1685_v34 = vpack.c.bf16 %v557_v19, %v545_v63  ;;  %v2740_v3 = vsub.f32 %v3380_v52, %v3251_v44  ;;  %v3248_v51 = vand.u32 4294901760, %v2508_v40  ;;  %v3383_v19 = vld [vmem:[#allocation18_spill] sm:$0xff]  ;;  %v3384_v63 = vld [vmem:[#allocation19_spill] sm:$0xff]  ;;  %v3405_v4 = vld [vmem:[#allocation52_spill] sm:$0xff] }
  0x8d   :  { %1866 = vmatpush1.bf16.msra.mxu0 %v2678_v25  ;;  %v3382_v25 = vld [vmem:[#allocation95_spill] sm:$0xff]  ;;  %v1687_v12 = vpack.c.bf16 %v575_v47, %v563_v14  ;;  %v2744_v37 = vpack.c.bf16 %v579_v20, %v567_v1  ;;  %v2746_v55 = vpack.c.bf16 %v597_v33, %v585_v29  ;;  %v3247_v11 = vand.u32 4294901760, %v2510_v42  ;;  %v3385_v47 = vld [vmem:[#allocation20_spill] sm:$0xff]  ;;  %v3386_v1 = vld [vmem:[#allocation21_spill] sm:$0xff] }
  0x8e   :  { %1868 = vmatprep.subr.bf16.mxu0 %v2680_v18  ;;  %v3249_v61 = vand.u32 4294901760, %v3382_v25  ;;  %v1689_v17 = vpack.c.bf16 %v581_v57, %v569_v13  ;;  %v2749_v10 = vpack.c.bf16 %v599_v43, %v587_v28  ;;  %v3246_v18 = vand.u32 4294901760, %v2517_v23  ;;  %v3387_v20 = vld [vmem:[#allocation22_spill] sm:$0xff]  ;;  %v3388_v14 = vld [vmem:[#allocation23_spill] sm:$0xff]  ;;  %v3392_v28 = vld [vmem:[#allocation29_spill] sm:$0xff] }
  0x8f   :  { %1678 = vmatpush1.bf16.msra.mxu1 %v1677_v62  ;;  %v593_v9 = vand.u32 4294901760, %v2732_v49  ;;  %v2759_v33 = vsub.f32 %v3381_v27, %v3250_v36  ;;  %v605_v62 = vand.u32 4294901760, %v2740_v3  ;;  %v2773_v22 = vsub.f32 %v2508_v40, %v3248_v51  ;;  %v3393_v43 = vld [vmem:[#allocation30_spill] sm:$0xff]  ;;  %v3413_v29 = vld [vmem:[#allocation64_spill] sm:$0xff]  ;;  %v3419_v13 = vld [vmem:[#allocation101_spill] sm:$0xff] }
  0x90   :  { %1680 = vmatprep.subr.bf16.mxu1 %v1679_v16  ;;  %v3257_v8 = vand.u32 4294901760, %v2530_v21  ;;  %v628_v15 = vsub.f32 %v2510_v42, %v3247_v11  ;;  %v2788_v59 = vsub.f32 %v2517_v23, %v3246_v18  ;;  %v3404_v44 = vld [vmem:[#allocation50_spill] sm:$0xff]  ;;  %v651_v35 = vand.u32 4294901760, %v3419_v13  ;;  %v3424_v16 = vld [vmem:[#allocation79_spill] sm:$0xff]  ;;  %v3425_v57 = vld [vmem:[#allocation80_spill] sm:$0xff] }
  0x91   :  { %1870 = vmatpush1.bf16.msra.mxu0 %v2685_v7  ;;  %v622_v7 = vsub.f32 %v3382_v25, %v3249_v61  ;;  %v611_v45 = vand.u32 4294901760, %v2759_v33  ;;  %v3414_v33 = vld [vmem:[#allocation65_spill] sm:$0xff]  ;;  %v3426_v11 = vld [vmem:[#allocation82_spill] sm:$0xff]  ;;  %v3427_v36 = vld [vmem:[#allocation83_spill] sm:$0xff]  ;;  %v3431_v18 = vand.u32 4294901760, %v3380_v52 }
  0x92   :  { %1872 = vmatprep.subr.bf16.mxu0 %v2698_v30  ;;  %v646_v30 = vsub.f32 %v2530_v21, %v3257_v8  ;;  %v617_v8 = vand.u32 4294901760, %v2773_v22  ;;  %v629_v50 = vand.u32 4294901760, %v628_v15  ;;  %v652_v61 = vsub.f32 %v3419_v13, %v651_v35 }
  0x93   :  { %1682 = vmatpush1.bf16.msra.mxu1 %v1681_v26  ;;  %v3398_v26 = vld [vmem:[#allocation99_spill] sm:$0xff]  ;;  %v623_v51 = vand.u32 4294901760, %v622_v7  ;;  %v1693_v7 = vpack.c.bf16 %v605_v62, %v593_v9  ;;  %v3432_v62 = vand.u32 4294901760, %v3381_v27  ;;  %v3434_v15 = vand.u32 4294901760, %v2508_v40 }
  0x94   :  { %1684 = vmatprep.subr.bf16.mxu1 %v1683_v0  ;;  %v639_v49 = vand.u32 4294901760, %v3398_v26  ;;  %v3420_v0 = vld [vmem:[#allocation73_spill] sm:$0xff]  ;;  %v1697_v22 = vpack.c.bf16 %v629_v50, %v617_v8  ;;  %v3438_v50 = vpack.c.bf16 %v3384_v63, %v3383_v19  ;;  %v3440_v8 = vld [vmem:[#allocation88_spill] sm:$0xff]  ;;  %v3445_v19 = vld [vmem:[#allocation90_spill] sm:$0xff] }
  0x95   :  { %1874 = vmatpush1.bf16.msra.mxu0 %v2712_v58  ;;  %v1695_v9 = vpack.c.bf16 %v623_v51, %v611_v45  ;;  %v3437_v45 = vand.u32 4294901760, %v2530_v21  ;;  %v3446_v63 = vld [vmem:[#allocation86_spill] sm:$0xff] }
  0x96   :  { %1876 = vmatprep.subr.bf16.mxu0 %v1875_v24  ;;  %v3421_v24 = vld [vmem:[#allocation74_spill] sm:$0xff]  ;;  %v640_v3 = vsub.f32 %v3398_v26, %v639_v49  ;;  %v653_v26 = vand.u32 4294901760, %v652_v61  ;;  %v3439_v61 = vld [vmem:[#allocation11_spill] sm:$0xff] }
  0x97   :  { %1686 = vmatpush1.bf16.msra.mxu1 %v1685_v34  ;;  %v3430_v34 = vand.u32 4294901760, %v3379_v41 }
  0x98   :  { %1688 = vmatprep.subr.bf16.mxu1 %v1687_v12 }
  0x99   :  { %1878 = vmatpush1.bf16.msra.mxu0 %v2723_v48  ;;  %v3429_v48 = vld [vmem:[#allocation87_spill] sm:$0xff]  ;;  %v1885_v58 = vpack.c.bf16 %v3431_v18, %v3430_v34  ;;  %v3435_v34 = vand.u32 4294901760, %v2510_v42 }
  0x9a   :  { %1880 = vmatprep.subr.bf16.mxu0 %v2727_v56  ;;  %v3433_v56 = vand.u32 4294901760, %v3382_v25 }
  0x9b   :  { %1690 = vmatpush1.bf16.msra.mxu1 %v1689_v17  ;;  %v635_v17 = vand.u32 4294901760, %v2788_v59  ;;  %v1889_v12 = vpack.c.bf16 %v3435_v34, %v3434_v15  ;;  %v1893_v59 = vpack.c.bf16 %v651_v35, %v639_v49  ;;  %v3443_v35 = vpack.c.bf16 %v3388_v14, %v3387_v20  ;;  %v3444_v49 = vld [vmem:[#allocation13_spill] sm:$0xff]  ;;  %v3452_v14 = vld [vmem:[#allocation16_spill] sm:$0xff] }
  0x9c   :  { %1692 = vmatprep.subr.bf16.mxu1 %v2749_v10  ;;  %v1887_v18 = vpack.c.bf16 %v3433_v56, %v3432_v62  ;;  %v641_v10 = vand.u32 4294901760, %v640_v3  ;;  %v3441_v3 = vpack.c.bf16 %v3386_v1, %v3385_v47  ;;  %v3449_v47 = vpack.c.bf16 %v2197_v2, %v2184_v60  ;;  %v3450_v1 = vld [vmem:[#allocation15_spill] sm:$0xff]  ;;  %v3456_v60 = vld [vmem:[#allocation24_spill] sm:$0xff]  ;;  %v3457_v2 = vld [vmem:[#allocation33_spill] sm:$0xff] }
  0x9d   :  { %1882 = vmatpush1.bf16.msra.mxu0 %v2744_v37  ;;  %v647_v37 = vand.u32 4294901760, %v646_v30  ;;  %v3451_v20 = vpack.c.bf16 %v3390_v38, %v3389_v46  ;;  %v3460_v46 = vld [vmem:[#allocation25_spill] sm:$0xff]  ;;  %v3461_v38 = vld [vmem:[#allocation36_spill] sm:$0xff] }
  0x9e   :  { %1884 = vmatprep.subr.bf16.mxu0 %v2746_v55  ;;  %v3436_v55 = vand.u32 4294901760, %v2517_v23  ;;  %v1701_v30 = vpack.c.bf16 %v653_v26, %v641_v10  ;;  %v3442_v26 = vld [vmem:[#allocation12_spill] sm:$0xff]  ;;  %v3472_v10 = vld [vmem:[#allocation39_spill] sm:$0xff] }
  0x9f   :  { %1694 = vmatpush1.bf16.msra.mxu1 %v1693_v7  ;;  %v1699_v51 = vpack.c.bf16 %v647_v37, %v635_v17  ;;  %v3453_v7 = vpack.c.bf16 %v2207_v6, %v3391_v5  ;;  %v3464_v6 = vld [vmem:[#allocation31_spill] sm:$0xff]  ;;  %v3465_v5 = vld [vmem:[#allocation38_spill] sm:$0xff]  ;;  %v3466_v37 = vld [vmem:[#allocation37_spill] sm:$0xff] }
  0xa0   :  { %1696 = vmatprep.subr.bf16.mxu1 %v1695_v9  ;;  %v1891_v56 = vpack.c.bf16 %v3437_v45, %v3436_v55  ;;  %v3458_v9 = vld [vmem:[#allocation32_spill] sm:$0xff]  ;;  %v3474_v55 = vld [vmem:[#allocation43_spill] sm:$0xff] }
  0xa1   :  { %1886 = vmatpush1.bf16.msra.mxu0 %v1885_v58  ;;  %v3447_v58 = vpack.c.bf16 %v2172_v54, %v2170_v53  ;;  %v3454_v53 = vld [vmem:[#allocation17_spill] sm:$0xff]  ;;  %v3455_v54 = vpack.c.bf16 %v3393_v43, %v3392_v28  ;;  %v3459_v62 = vpack.c.bf16 %v3457_v2, %v3458_v9  ;;  %v3468_v28 = vld [vmem:[#allocation34_spill] sm:$0xff]  ;;  %v3470_v15 = vld [vmem:[#allocation40_spill] sm:$0xff] }
  0xa2   :  { %1888 = vmatprep.subr.bf16.mxu0 %v1887_v18  ;;  %v3462_v18 = vld [vmem:[#allocation35_spill] sm:$0xff]  ;;  %v3469_v43 = vld [vmem:[#allocation41_spill] sm:$0xff]  ;;  %v3500_v2 = vld [vmem:[#allocation68_spill] sm:$0xff] }
  0xa3   :  { %1698 = vmatpush1.bf16.msra.mxu1 %v1697_v22  ;;  %v3463_v17 = vpack.c.bf16 %v3461_v38, %v3462_v18  ;;  %v3467_v22 = vpack.c.bf16 %v3465_v5, %v3466_v37  ;;  %v3471_v34 = vpack.c.bf16 %v3469_v43, %v3470_v15  ;;  %v3501_v9 = vld [vmem:[#allocation67_spill] sm:$0xff]  ;;  %v3505_v18 = vld [vmem:[#allocation70_spill] sm:$0xff]  ;;  %v3508_v5 = vpack.c.bf16 %v3421_v24, %v3420_v0  ;;  %v3515_v0 = vld [vmem:[#allocation81_spill] sm:$0xff] }
  0xa4   :  { %1700 = vmatprep.subr.bf16.mxu1 %v1699_v51  ;;  %v3473_v51 = vld [vmem:[#allocation44_spill] sm:$0xff]  ;;  %v3504_v38 = vld [vmem:[#allocation71_spill] sm:$0xff]  ;;  %v3514_v43 = vpack.c.bf16 %v3427_v36, %v3426_v11  ;;  %v3516_v24 = vld [vmem:[#allocation85_spill] sm:$0xff]  ;;  %v3523_v11 = vpack.c.bf16 %v2510_v42, %v2508_v40  ;;  %v1462_v42 = vstv %s3010_s30  ;;  %v1473_v40 = vstv %s3012_s7 }
  0xa5   :  { %1890 = vmatpush1.bf16.msra.mxu0 %v1889_v12  ;;  %v3448_v12 = vld [vmem:[#allocation14_spill] sm:$0xff]  ;;  %v3475_v45 = vpack.c.bf16 %v3473_v51, %v3474_v55  ;;  %v3511_v37 = vld [vmem:[#allocation75_spill] sm:$0xff]  ;;  %v3517_v15 = vpack.c.bf16 %v3429_v48, %v3516_v24  ;;  %v3524_v48 = vld [vmem:[#allocation97_spill] sm:$0xff]  ;;  %v1517_v51 = vstv %s3020_s11  ;;  %v1528_v55 = vstv %s3022_s2 }
  0xa6   :  { %1892 = vmatprep.subr.bf16.mxu0 %v1891_v56  ;;  %v3476_v56 = vld [vmem:[#allocation42_spill] sm:$0xff] }
  0xa7   :  { %1702 = vmatpush1.bf16.msra.mxu1 %v1701_v30  ;;  %v3477_v30 = vld [vmem:[#allocation47_spill] sm:$0xff]  ;;  %v3522_v36 = vld [vmem:[#allocation94_spill] sm:$0xff] }
  0xa8   :  { %1704 = vmatprep.subr.bf16.mxu1 %v3438_v50 }
  0xa9   :  { %1894 = vmatpush1.bf16.msra.mxu0 %v1893_v59  ;;  %v3478_v59 = vld [vmem:[#allocation46_spill] sm:$0xff] }
  0xaa   :  { %1896 = vmatprep.subr.bf16.mxu0 %v3439_v61  ;;  %658 = vmatmul.mubr.f32.vlgmr.msra.gmra.mrb[0].mxu1 %v3440_v8  ;;  %v3479_v50 = vpack.c.bf16 %v3477_v30, %v3478_v59  ;;  %v3480_v61 = vld [vmem:[#allocation45_spill] sm:$0xff] }
  0xab   :  { %1706 = vmatpush1.bf16.msra.mxu1 %v3441_v3  ;;  %858 = vmatprep.mubr.f32.mxu1 %v3445_v19  ;;  %v3481_v3 = vld [vmem:[#allocation48_spill] sm:$0xff]  ;;  %v3485_v19 = vld [vmem:[#allocation51_spill] sm:$0xff] }
  0xac   :  { %1267 = vmatmul.mubr.f32.vlgmr.msra.gmra.mrb[0].mxu0 %v3440_v8  ;;  %1708 = vmatprep.subr.bf16.mxu1 %v3443_v35  ;;  %v3483_v35 = vld [vmem:[#allocation49_spill] sm:$0xff] }
  0xad   :  { %1898 = vmatpush1.bf16.msra.mxu0 %v3442_v26  ;;  %1402 = vmatprep.mubr.f32.mxu0 %v3446_v63  ;;  %v3482_v26 = vpack.c.bf16 %v3404_v44, %v3481_v3  ;;  %v3486_v63 = vld [vmem:[#allocation56_spill] sm:$0xff]  ;;  %v3493_v44 = vld [vmem:[#allocation57_spill] sm:$0xff]  ;;  %v1497_v3 = vstv %s3032_s16 }
  0xae   :  { %1900 = vmatprep.subr.bf16.mxu0 %v3444_v49  ;;  %v3484_v49 = vpack.c.bf16 %v3406_v31, %v3405_v4  ;;  %v3497_v31 = vld [vmem:[#allocation60_spill] sm:$0xff]  ;;  %v3498_v4 = vpack.c.bf16 %v3414_v33, %v3413_v29  ;;  %v3510_v33 = vpack.c.bf16 %v3423_v32, %v3422_v39  ;;  %v3519_v39 = vpack.c.bf16 %v3380_v52, %v3379_v41  ;;  %v3526_v52 = vld [vmem:[#allocation98_spill] sm:$0xff]  ;;  %v3527_v41 = vld [vmem:[#allocation99_spill] sm:$0xff] }
  0xaf   :  { %1710 = vmatpush1.bf16.msra.mxu1 %v3447_v58  ;;  %v3487_v58 = vld [vmem:[#allocation55_spill] sm:$0xff]  ;;  %v3509_v29 = vld [vmem:[#allocation72_spill] sm:$0xff] }
  0xb0   :  { %1712 = vmatprep.subr.bf16.mxu1 %v3449_v47  ;;  %v3489_v47 = vld [vmem:[#allocation54_spill] sm:$0xff]  ;;  %v3518_v32 = vld [vmem:[#allocation84_spill] sm:$0xff] }
  0xb1   :  { %1902 = vmatpush1.bf16.msra.mxu0 %v3448_v12  ;;  %v3488_v12 = vpack.c.bf16 %v3486_v63, %v3487_v58  ;;  %v1455_v63 = vstv %s3040_s20  ;;  %v1519_v58 = vstv %s3036_s18 }
  0xb2   :  { %1904 = vmatprep.subr.bf16.mxu0 %v3450_v1  ;;  %v3490_v1 = vld [vmem:[#allocation59_spill] sm:$0xff] }
  0xb3   :  { %1714 = vmatpush1.bf16.msra.mxu1 %v3451_v20  ;;  %v3491_v20 = vld [vmem:[#allocation58_spill] sm:$0xff] }
  0xb4   :  { %1716 = vmatprep.subr.bf16.mxu1 %v3453_v7  ;;  %v3494_v7 = vld [vmem:[#allocation62_spill] sm:$0xff] }
  0xb5   :  { %1906 = vmatpush1.bf16.msra.mxu0 %v3452_v14  ;;  %v3492_v14 = vpack.c.bf16 %v3490_v1, %v3491_v20  ;;  %v1467_v1 = vstv %s3042_s21  ;;  %v1478_v20 = vstv %s3044_s22 }
  0xb6   :  { %1908 = vmatprep.subr.bf16.mxu0 %v3454_v53  ;;  %v3495_v53 = vld [vmem:[#allocation61_spill] sm:$0xff] }
  0xb7   :  { %1718 = vmatpush1.bf16.msra.mxu1 %v3455_v54  ;;  %v3496_v54 = vpack.c.bf16 %v3494_v7, %v3495_v53 }
  0xb8   :  { %1720 = vmatprep.subr.bf16.mxu1 %v3459_v62  ;;  %v3502_v62 = vpack.c.bf16 %v3500_v2, %v3501_v9 }
  0xb9   :  { %1910 = vmatpush1.bf16.msra.mxu0 %v3456_v60  ;;  %v3499_v60 = vld [vmem:[#allocation63_spill] sm:$0xff] }
  0xba   :  { %1912 = vmatprep.subr.bf16.mxu0 %v3460_v46  ;;  %v3503_v46 = vld [vmem:[#allocation66_spill] sm:$0xff] }
  0xbb   :  { %1722 = vmatpush1.bf16.msra.mxu1 %v3463_v17  ;;  %v3506_v17 = vpack.c.bf16 %v3504_v38, %v3505_v18 }
  0xbc   :  { %1724 = vmatprep.subr.bf16.mxu1 %v3467_v22  ;;  %v3512_v22 = vpack.c.bf16 %v3425_v57, %v3424_v16  ;;  %v3520_v57 = vld [vmem:[#allocation91_spill] sm:$0xff]  ;;  %v3521_v16 = vpack.c.bf16 %v3382_v25, %v3381_v27  ;;  %v3529_v27 = vld [vmem:[#allocation100_spill] sm:$0xff] }
  0xbd   :  { %1914 = vmatpush1.bf16.msra.mxu0 %v3464_v6  ;;  %v3507_v6 = vld [vmem:[#allocation69_spill] sm:$0xff]  ;;  %v3530_v25 = vld [vmem:[#allocation96_spill] sm:$0xff] }
  0xbe   :  { %1916 = vmatprep.subr.bf16.mxu0 %v3468_v28  ;;  %v3513_v28 = vld [vmem:[#allocation78_spill] sm:$0xff] }
  0xbf   :  { %1726 = vmatpush1.bf16.msra.mxu1 %v3471_v34  ;;  %v3525_v34 = vpack.c.bf16 %v2530_v21, %v2517_v23  ;;  %v1450_v23 = vstv %s3008_s4  ;;  %v1484_v21 = vstv %s3014_s8  ;;  %s3088_s4 = sld [smem:[#allocation8 + $0x5]]  ;;  %s1573_s8 = sld [smem:[#allocation8 + $0x6]] }
  0xc0   :  { %1728 = vmatprep.subr.bf16.mxu1 %v3475_v45  ;;  %v1452_v45 = vstv %s3024_s12 }
  0xc1   :  { %1918 = vmatpush1.bf16.msra.mxu0 %v3472_v10  ;;  %v3528_v10 = vpack.c.bf16 %v3419_v13, %v3527_v41  ;;  %v1495_v13 = vstv %s3016_s9  ;;  %v1511_v41 = vstv %s3072_s25  ;;  %s1574_s9 = sld [smem:[#allocation8 + $0x7]] }
  0xc2   :  { %1920 = vmatprep.subr.bf16.mxu0 %v3476_v56  ;;  %v1464_v56 = vstv %s3026_s13 }
  0xc3   :  { %1730 = vmatpush1.bf16.msra.mxu1 %v3479_v50  ;;  %v1475_v50 = vstv %s3028_s14 }
  0xc4   :  { %1732 = vmatprep.subr.bf16.mxu1 %v3482_v26  ;;  %v1508_v26 = vstv %s3034_s17 }
  0xc5   :  { %1922 = vmatpush1.bf16.msra.mxu0 %v3480_v61  ;;  %v1486_v61 = vstv %s3030_s15 }
  0xc6   :  { %1924 = vmatprep.subr.bf16.mxu0 %v3483_v35 }
  0xc7   :  { %1734 = vmatpush1.bf16.msra.mxu1 %v3484_v49 }
  0xc8   :  { %1736 = vmatprep.subr.bf16.mxu1 %v3488_v12  ;;  %v1530_v12 = vstv %s3038_s19 }
  0xc9   :  { %1926 = vmatpush1.bf16.msra.mxu0 %v3485_v19 }
  0xca   :  { %1928 = vmatprep.subr.bf16.mxu0 %v3489_v47 }
  0xcb   :  { %1738 = vmatpush1.bf16.msra.mxu1 %v3492_v14  ;;  %v1489_v14 = vstv %s3046_s23 }
  0xcc   :  { %1740 = vmatprep.subr.bf16.mxu1 %v3496_v54 }
  0xcd   :  { %1930 = vmatpush1.bf16.msra.mxu0 %v3493_v44 }
  0xce   :  { %1932 = vmatprep.subr.bf16.mxu0 %v3497_v31 }
  0xcf   :  { %1742 = vmatpush1.bf16.msra.mxu1 %v3498_v4 }
  0xd0   :  { %1744 = vmatprep.subr.bf16.mxu1 %v3502_v62 }
  0xd1   :  { %1934 = vmatpush1.bf16.msra.mxu0 %v3499_v60 }
  0xd2   :  { %1936 = vmatprep.subr.bf16.mxu0 %v3503_v46 }
  0xd3   :  { %1746 = vmatpush1.bf16.msra.mxu1 %v3506_v17 }
  0xd4   :  { %1748 = vmatprep.subr.bf16.mxu1 %v3508_v5 }
  0xd5   :  { %1938 = vmatpush1.bf16.msra.mxu0 %v3507_v6 }
  0xd6   :  { %1940 = vmatprep.subr.bf16.mxu0 %v3509_v29 }
  0xd7   :  { %1750 = vmatpush1.bf16.msra.mxu1 %v3510_v33 }
  0xd8   :  { %1752 = vmatprep.subr.bf16.mxu1 %v3512_v22 }
  0xd9   :  { %1942 = vmatpush1.bf16.msra.mxu0 %v3511_v37 }
  0xda   :  { %1944 = vmatprep.subr.bf16.mxu0 %v3513_v28 }
  0xdb   :  { %1754 = vmatpush1.bf16.msra.mxu1 %v3514_v43 }
  0xdc   :  { %1756 = vmatprep.subr.bf16.mxu1 %v3517_v15 }
  0xdd   :  { %1946 = vmatpush1.bf16.msra.mxu0 %v3515_v0 }
  0xde   :  { %1948 = vmatprep.subr.bf16.mxu0 %v3518_v32 }
  0xdf   :  { %1758 = vmatpush1.bf16.msra.mxu1 %v3519_v39 }
  0xe0   :  { %1760 = vmatprep.subr.bf16.mxu1 %v3521_v16  ;;  %v1500_v16 = vstv %s3065_s24 }
  0xe1   :  { %1950 = vmatpush1.bf16.msra.mxu0 %v3520_v57  ;;  %v1458_v57 = vstv %s3067_s5 }
  0xe2   :  { %1952 = vmatprep.subr.bf16.mxu0 %v3522_v36 }
  0xe3   :  { %1762 = vmatpush1.bf16.msra.mxu1 %v3523_v11 }
  0xe4   :  { %1764 = vmatprep.subr.bf16.mxu1 %v3525_v34  ;;  %v1460_v34 = vstv %s3107_s3 }
  0xe5   :  { %1954 = vmatpush1.bf16.msra.mxu0 %v3524_v48 }
  0xe6   :  { %1956 = vmatprep.subr.bf16.mxu0 %v3526_v52  ;;  %v1470_v52 = vstv %s3074_s26 }
  0xe7   :  { %1766 = vmatpush1.bf16.msra.mxu1 %v3528_v10 }
  0xe9   :  { %1958 = vmatpush1.bf16.msra.mxu0 %v3529_v27 }
  0xea   :  { %861 = vmatmul.mubr.f32.vlgmr.msra.gmra.mrb[0].mxu1 %v3530_v25 }
  0xec   :  { %1404 = vmatmul.mubr.f32.vlgmr.msra.gmra.mrb[0].mxu0 %v3440_v8  ;;  %v1506_v8 = vstv %s3018_s10 }
 0x1bd   :  { %v862_v30 = vpop.f32.mrb[0].mxu1 }
 0x1be   :  { %v864_v49 = vpop.f32.mrb[1].mxu1 }
 0x1bf   :  { %v1405_v59 = vpop.f32.mrb[0].mxu0 }
 0x1c0   :  { %v1959_v35 = vadd.f32 %v1405_v59, %v862_v30  ;;  %v1407_v19 = vpop.f32.mrb[1].mxu0 }
 0x1c1   :  { %v1960_v47 = vadd.f32 %v1407_v19, %v864_v49  ;;  %v1514_v49 = vstv %s3088_s4 }
 0x1c2   :  { %v1451_v44 = vmul.f32 %v1959_v35, %v1450_v23  ;;  %v1463_v7 = vmul.f32 %v1959_v35, %v1462_v42  ;;  %v1474_v53 = vmul.f32 %v1959_v35, %v1473_v40  ;;  %v1485_v54 = vmul.f32 %v1959_v35, %v1484_v21 }
 0x1c3   :  { %v1496_v31 = vmul.f32 %v1959_v35, %v1495_v13  ;;  %v1507_v4 = vmul.f32 %v1959_v35, %v1506_v8  ;;  %v1518_v60 = vmul.f32 %v1959_v35, %v1517_v51  ;;  %v1529_v2 = vmul.f32 %v1959_v35, %v1528_v55 }
 0x1c4   :  { %v1453_v9 = vmul.f32 %v1960_v47, %v1452_v45  ;;  %v1465_v62 = vmul.f32 %v1960_v47, %v1464_v56  ;;  %v1476_v46 = vmul.f32 %v1960_v47, %v1475_v50  ;;  %v1487_v38 = vmul.f32 %v1960_v47, %v1486_v61 }
 0x1c5   :  { %v1498_v18 = vmul.f32 %v1960_v47, %v1497_v3  ;;  %v1509_v17 = vmul.f32 %v1960_v47, %v1508_v26  ;;  %v1520_v6 = vmul.f32 %v1960_v47, %v1519_v58  ;;  %v1531_v5 = vmul.f32 %v1960_v47, %v1530_v12 }
 0x1c6   :  { %v1454_v29 = vadd.f32 %v1453_v9, %v1451_v44  ;;  %v1466_v33 = vadd.f32 %v1465_v62, %v1463_v7  ;;  %v1477_v37 = vadd.f32 %v1476_v46, %v1474_v53  ;;  %v1488_v22 = vadd.f32 %v1487_v38, %v1485_v54 }
 0x1c7   :  { %v1499_v28 = vadd.f32 %v1498_v18, %v1496_v31  ;;  %v1510_v43 = vadd.f32 %v1509_v17, %v1507_v4  ;;  %v1521_v0 = vadd.f32 %v1520_v6, %v1518_v60  ;;  %v1532_v24 = vadd.f32 %v1531_v5, %v1529_v2 }
 0x1c8   :  { %v1456_v15 = vadd.f32 %v1455_v63, %v1454_v29  ;;  %v1468_v32 = vadd.f32 %v1467_v1, %v1466_v33  ;;  %v1479_v39 = vadd.f32 %v1478_v20, %v1477_v37  ;;  %v1490_v48 = vadd.f32 %v1489_v14, %v1488_v22 }
 0x1c9   :  { %v1501_v25 = vadd.f32 %v1500_v16, %v1499_v28  ;;  %v1481_v23 = vstv %s3078_s28  ;;  %v1522_v42 = vstv %s3076_s27  ;;  %v1512_v8 = vadd.f32 %v1511_v41, %v1510_v43 }
 0x1ca   :  { %v1457_v36 = vmax.f32 %v1456_v15, 0.0  ;;  %v1469_v11 = vmax.f32 %v1468_v32, 0.0  ;;  %v1480_v27 = vmax.f32 %v1479_v39, 0.0  ;;  %v1491_v13 = vmax.f32 %v1490_v48, 0.0 }
 0x1cb   :  { %v1492_v51 = vstv %s3082_s1  ;;  %v1533_v55 = vstv %s3080_s29  ;;  %v1502_v30 = vmax.f32 %v1501_v25, 0.0  ;;  %v1523_v59 = vadd.f32 %v1522_v42, %v1521_v0 }
 0x1cc   :  { %v1459_v10 = vmul.f32 %v1458_v57, %v1457_v36  ;;  %v1471_v21 = vmul.f32 %v1470_v52, %v1469_v11  ;;  %v1482_v56 = vmul.f32 %v1481_v23, %v1480_v27  ;;  %v1503_v50 = vstv %s3084_s0 }
 0x1cd   :  { %v1493_v3 = vmul.f32 %v1492_v51, %v1491_v13  ;;  %v1513_v26 = vmax.f32 %v1512_v8, 0.0  ;;  %v1534_v35 = vadd.f32 %v1533_v55, %v1532_v24  ;;  %v1504_v63 = vmul.f32 %v1503_v50, %v1502_v30 }
 0x1ce   :  { %v1461_v40 = vadd.f32 %v1460_v34, %v1459_v10  ;;  %v1524_v58 = vmax.f32 %v1523_v59, 0.0  ;;  %v1525_v12 = vstv %s1573_s8  ;;  %v1536_v14 = vstv %s1574_s9 }
 0x1cf   :  { %v1515_v1 = vmul.f32 %v1514_v49, %v1513_v26  ;;  %v1535_v20 = vmax.f32 %v1534_v35, 0.0 }
 0x1d0   :  { %v1472_v45 = vadd.f32 %v1471_v21, %v1461_v40  ;;  %v1526_v7 = vmul.f32 %v1525_v12, %v1524_v58 }
 0x1d1   :  { %v1537_v54 = vmul.f32 %v1536_v14, %v1535_v20 }
 0x1d2   :  { %v1483_v61 = vadd.f32 %v1482_v56, %v1472_v45 }
 0x1d4   :  { %v1494_v19 = vadd.f32 %v1493_v3, %v1483_v61 }
 0x1d6   :  { %v1505_v47 = vadd.f32 %v1504_v63, %v1494_v19 }
 0x1d8   :  { %v1516_v44 = vadd.f32 %v1515_v1, %v1505_v47 }
 0x1da   :  { %v1527_v53 = vadd.f32 %v1526_v7, %v1516_v44 }
 0x1dc   :  { %v1538_v31 = vadd.f32 %v1537_v54, %v1527_v53 }
 0x1de   :  { %1539 = vst [vmem:[%s3110_s6] sm:$0xff] %v1538_v31 }
 0x1df   :  { %1544 = vsyncpa [#allocation5], 1 }
 0x1e0   :  { %1545 = vsyncpa [#allocation7], 1 }

</bundles_post_ra>
